<compile_context>
chip_gen: v5e
topology: v5e:2x2
jax: 0.10.0
libtpu: 0.0.40
codegen_flags: <defaults>
</compile_context>

<pallas_src>
import jax
import jax.numpy as jnp
import numpy as np
from jax.experimental import pallas as pl
from jax.experimental.pallas import tpu as pltpu


# ----------------------- fused LSTM + FC kernel -----------------------------
def lstm_fused_kernel(emb_ref, wih_ref, whh_ref, bias_ref, wfc_ref, bfc_ref,
                      out_ref, xp_ref, h_all_ref):
    """One batch block: input projection -> recurrence -> FC, all in VMEM.

    emb_ref  : (T, bb, E)  embedded tokens, time-major
    wih_ref  : (E, 4H)     W_ih^T (f32 or bf16; grid-invariant)
    whh_ref  : (H, 4H)     W_hh^T
    bias_ref : (1, 4H)     b_ih + b_hh (f32)
    wfc_ref  : (H, V)      W_fc^T
    bfc_ref  : (1, V)      b_fc (f32)
    out_ref  : (bb, T, V)  logits, lane-dense last dim
    xp_ref   : VMEM (T, bb, 4H) scratch -- hoisted x @ W_ih + bias (never HBM)
    h_all_ref: VMEM (T, bb, H)  scratch -- all hidden states
    """
    T, bb, _ = emb_ref.shape
    H = whh_ref.shape[0]
    mm_dtype = whh_ref.dtype
    unroll = max(1, min(T, 8))   # partial unroll: LLO visibility, no blowup

    # --- 1) hoisted input projection (no serial dependency) -----------------
    wih = wih_ref[...]
    bias = bias_ref[...]

    def xp_step(t, carry):
        x_t = emb_ref[t].astype(mm_dtype)                     # (bb, E)
        xp = jnp.dot(x_t, wih, preferred_element_type=jnp.float32) + bias
        xp_ref[t] = xp.astype(xp_ref.dtype)
        return carry

    jax.lax.fori_loop(0, T, xp_step, 0, unroll=unroll)

    # --- 2) recurrence: only (bb, H) @ (H, 4H) stays on the serial path ------
    whh = whh_ref[...]

    def step(t, carry):
        h, c = carry
        gates = xp_ref[t].astype(jnp.float32) + jnp.dot(
            h.astype(mm_dtype), whh, preferred_element_type=jnp.float32)
        # PyTorch gate order (i, f, g, o); i and f share one sigmoid call.
        # (With production H a multiple of 128 these slices are exact lane
        #  tiles; all elementwise/state math stays f32 for v5e.)
        i_f = jax.nn.sigmoid(gates[:, :2 * H])
        g = jnp.tanh(gates[:, 2 * H:3 * H])
        o = jax.nn.sigmoid(gates[:, 3 * H:])
        c_new = i_f[:, H:] * c + i_f[:, :H] * g
        h_new = o * jnp.tanh(c_new)
        h_all_ref[t] = h_new.astype(h_all_ref.dtype)          # VMEM only
        return h_new, c_new

    h0 = jnp.zeros((bb, H), jnp.float32)
    c0 = jnp.zeros((bb, H), jnp.float32)
    jax.lax.fori_loop(0, T, step, (h0, c0), unroll=unroll)

    # --- 3) FC epilogue: ONE (bb*T, H) @ (H, V) MXU matmul -------------------
    # Time-major -> batch-major reorder via static per-b slices + a single
    # concatenate on H-wide data (off the serial path), then one big matmul
    # and contiguous lane-dense stores into the (B, T, V) output.
    # TODO(synk): replace the slice+concatenate reorder with a single
    # jnp.swapaxes once Mosaic's major-dim transpose lowering is universal.
    hs = h_all_ref[...]                                       # (T, bb, H)
    hs_bmaj = jnp.concatenate([hs[:, b, :] for b in range(bb)], axis=0)
    logits = (jnp.dot(hs_bmaj, wfc_ref[...],
                      preferred_element_type=jnp.float32) + bfc_ref[...])
    for b in range(bb):                                       # contiguous stores
        out_ref[b] = logits[b * T:(b + 1) * T, :].astype(out_ref.dtype)


# ------------------------- block-size / VMEM policy --------------------------
def _select_batch_block(B, T, E, H, V, emb_bytes, w_bytes, mm_bytes,
                        budget_bytes=48 * 1024 * 1024, bb_cap=256):
    """Largest valid batch block that fits the VMEM budget.

    Valid bb: divides B and is a multiple of 8 (sublane tile), or bb == B
    (full-extent block).  Larger bb => more MXU rows per serial timestep.
    """
    def vmem_need(bb):
        emb_blk = 2 * T * bb * E * emb_bytes            # double-buffered input
        out_blk = 2 * bb * T * V * 4                    # double-buffered output
        weights = 2 * (E * 4 * H + H * 4 * H + H * V) * w_bytes   # conservative
        scratch = T * bb * (4 * H + H) * mm_bytes       # xp + h_all
        return emb_blk + out_blk + weights + scratch

    cands = {c for c in range(8, min(B, bb_cap) + 1, 8) if B % c == 0}
    if B <= bb_cap:
        cands.add(B)                                    # full-extent block
    cands = sorted(cands, reverse=True) or [B]
    # TODO(synk): on v7x (2 TensorCores) prefer a bb with B // bb >= 2 so the
    # "parallel" grid axis is sharded across both cores.
    for bb in cands:
        if vmem_need(bb) <= budget_bytes:
            return bb, vmem_need(bb)
    bb = cands[-1]
    return bb, vmem_need(bb)


# ------------------------------ pallas wrapper -------------------------------
def lstm_fused(emb_tbe, w_ih_t, w_hh_t, bias, w_fc_t, b_fc, *,
               bb, vmem_limit_bytes):
    T, B, E = emb_tbe.shape
    H = w_hh_t.shape[0]
    H4 = 4 * H
    V = w_fc_t.shape[1]
    mm_dtype = w_hh_t.dtype
    assert B % bb == 0

    def invariant_spec(shape):
        # Grid-invariant operand (constant index_map): single-buffer it so the
        # pipeline does not hold two copies of the weights in VMEM.
        index_map = lambda i: (0,) * len(shape)
        try:
            return pl.BlockSpec(shape, index_map, pipeline_mode=pl.Buffered(1))
        except (AttributeError, TypeError):   # older jax without pipeline_mode
            return pl.BlockSpec(shape, index_map)

    return pl.pallas_call(
        lstm_fused_kernel,
        out_shape=jax.ShapeDtypeStruct((B, T, V), jnp.float32),
        grid_spec=pltpu.PrefetchScalarGridSpec(
            num_scalar_prefetch=0,
            grid=(B // bb,),
            in_specs=[
                pl.BlockSpec((T, bb, E), lambda i: (0, i, 0)),
                invariant_spec((E, H4)),
                invariant_spec((H, H4)),
                invariant_spec((1, H4)),
                invariant_spec((H, V)),
                invariant_spec((1, V)),
            ],
            out_specs=pl.BlockSpec((bb, T, V), lambda i: (i, 0, 0)),
            scratch_shapes=[
                pltpu.VMEM((T, bb, H4), mm_dtype),   # xp (never touches HBM)
                pltpu.VMEM((T, bb, H), mm_dtype),    # hidden states
            ],
        ),
        compiler_params=pltpu.CompilerParams(
            dimension_semantics=("parallel",),
            vmem_limit_bytes=vmem_limit_bytes),
    )(emb_tbe, w_ih_t, w_hh_t, bias, w_fc_t, b_fc)


# ------------------------------ parameter prep -------------------------------
def prepare_params(params, use_bf16=False):
    """Pre-transpose / pre-fuse parameters once (not on every forward call).

    use_bf16=True casts the MXU operands (embedding table, w_ih, w_hh, w_fc)
    to bfloat16 for v6e/v7x throughput and halved DMA bytes; accumulation and
    all elementwise/state math stay f32.
    """
    w_dtype = jnp.bfloat16 if use_bf16 else jnp.float32
    return {
        "embedding": params["embedding"].astype(w_dtype),               # (Vc, E)
        "w_ih_t": params["w_ih"].T.astype(w_dtype),                     # (E, 4H)
        "w_hh_t": params["w_hh"].T.astype(w_dtype),                     # (H, 4H)
        "bias": (params["b_ih"] + params["b_hh"]).reshape(1, -1)
                .astype(jnp.float32),                                   # (1, 4H)
        "w_fc_t": params["w_fc"].T.astype(w_dtype),                     # (H, V)
        "b_fc": params["b_fc"].reshape(1, -1).astype(jnp.float32),      # (1, V)
    }


# ------------------------------- model forward -------------------------------
def _lstm_model_forward(token_ids, prep):
    """token_ids: (B, T) int32. Returns logits (B, T, V) float32."""
    B, T = token_ids.shape
    E = prep["embedding"].shape[1]
    H = prep["w_hh_t"].shape[0]
    V = prep["w_fc_t"].shape[1]
    emb_bytes = jnp.dtype(prep["embedding"].dtype).itemsize
    w_bytes = jnp.dtype(prep["w_hh_t"].dtype).itemsize

    bb, vmem_est = _select_batch_block(B, T, E, H, V,
                                       emb_bytes, w_bytes, w_bytes)
    vmem_limit = int(min(100 * 1024 * 1024,
                         max(32 * 1024 * 1024, 1.3 * vmem_est)))
    # TODO(synk): if vmem_est exceeds the budget even at the smallest bb (long
    # T / huge V), stream T-chunks of xp / logits via pl.ANY + make_async_copy
    # instead of shrinking bb below MXU-friendly sizes.

    # Embedding gather directly in time-major layout (no separate transpose).
    emb_tbe = jnp.take(prep["embedding"], token_ids.T, axis=0)   # (T, B, E)
    return lstm_fused(emb_tbe, prep["w_ih_t"], prep["w_hh_t"], prep["bias"],
                      prep["w_fc_t"], prep["b_fc"],
                      bb=bb, vmem_limit_bytes=vmem_limit)


lstm_model_forward = jax.jit(_lstm_model_forward)


# ----------------------------- pure-JAX reference ----------------------------
def lstm_model_reference(token_ids, params):
    emb = jnp.take(params["embedding"], token_ids, axis=0)      # (B, T, E)
    B, T, E = emb.shape
    H = params["w_hh"].shape[1]
    w_ih_t = params["w_ih"].T
    w_hh_t = params["w_hh"].T
    bias = params["b_ih"] + params["b_hh"]

    def step(carry, x_t):
        h, c = carry
        gates = x_t @ w_ih_t + h @ w_hh_t + bias
        i = jax.nn.sigmoid(gates[:, 0 * H:1 * H])
        f = jax.nn.sigmoid(gates[:, 1 * H:2 * H])
        g = jnp.tanh(gates[:, 2 * H:3 * H])
        o = jax.nn.sigmoid(gates[:, 3 * H:4 * H])
        c = f * c + i * g
        h = o * jnp.tanh(c)
        return (h, c), h

    h0 = jnp.zeros((B, H), jnp.float32)
    c0 = jnp.zeros((B, H), jnp.float32)
    _, hs = jax.lax.scan(step, (h0, c0), jnp.transpose(emb, (1, 0, 2)))
    h_bth = jnp.transpose(hs, (1, 0, 2))
    return h_bth @ params["w_fc"].T + params["b_fc"]


# ------------------------------------ main ------------------------------------
if __name__ == "__main__":
    vocab_size, embed_dim, hidden_dim = 128, 32, 32
    B, T = 2, 8

    key = jax.random.PRNGKey(0)
    keys = jax.random.split(key, 8)
    s = 0.1
    params = {
        "embedding": s * jax.random.normal(keys[0], (vocab_size, embed_dim), jnp.float32),
        "w_ih": s * jax.random.normal(keys[1], (4 * hidden_dim, embed_dim), jnp.float32),
        "w_hh": s * jax.random.normal(keys[2], (4 * hidden_dim, hidden_dim), jnp.float32),
        "b_ih": s * jax.random.normal(keys[3], (4 * hidden_dim,), jnp.float32),
        "b_hh": s * jax.random.normal(keys[4], (4 * hidden_dim,), jnp.float32),
        "w_fc": s * jax.random.normal(keys[5], (vocab_size, hidden_dim), jnp.float32),
        "b_fc": s * jax.random.normal(keys[6], (vocab_size,), jnp.float32),
    }

    token_ids = jax.random.randint(keys[7], (B, T), 0, vocab_size, dtype=jnp.int32)

    ref = jax.block_until_ready(lstm_model_reference(token_ids, params))

    # f32 MXU path: tight check against the f32 reference.
    prep_f32 = prepare_params(params, use_bf16=False)
    logits = jax.block_until_ready(lstm_model_forward(token_ids, prep_f32))
    assert logits.shape == (B, T, vocab_size)
    np.testing.assert_allclose(np.asarray(logits), np.asarray(ref),
                               rtol=1e-4, atol=1e-4)

    # bf16 MXU path (v6e/v7x recommendation): looser tolerance vs f32 reference.
    prep_bf16 = prepare_params(params, use_bf16=True)
    logits_bf16 = jax.block_until_ready(lstm_model_forward(token_ids, prep_bf16))
    np.testing.assert_allclose(np.asarray(logits_bf16), np.asarray(ref),
                               rtol=2e-2, atol=2e-2)

    print("KERNEL_OK")
</pallas_src>

<mosaic_0001>
module attributes {stable_mosaic.version = 11 : i64} {
  func.func @lstm_fused_kernel(%arg0: i32, %arg1: memref<8x2x32xf32, #tpu.memory_space<vmem>>, %arg2: memref<32x128xf32, #tpu.memory_space<vmem>>, %arg3: memref<32x128xf32, #tpu.memory_space<vmem>>, %arg4: memref<1x128xf32, #tpu.memory_space<vmem>>, %arg5: memref<32x128xf32, #tpu.memory_space<vmem>>, %arg6: memref<1x128xf32, #tpu.memory_space<vmem>>, %arg7: memref<2x8x128xf32, #tpu.memory_space<vmem>>, %arg8: memref<8x2x128xf32, #tpu.memory_space<vmem>>, %arg9: memref<8x2x32xf32, #tpu.memory_space<vmem>>) attributes {dimension_semantics = [#tpu.dimension_semantics<parallel>], iteration_bounds = array<i64: 1>, scalar_prefetch = 0 : i64, scratch_operands = 2 : i64, tpu.core_type = #tpu.core_type<tc>, window_params = [{transform_indices = @transform_0, window_bounds = array<i64: 8, 2, 32>}, {pipeline_mode = #tpu.pipeline_mode<synchronous>, transform_indices = @transform_1, window_bounds = array<i64: 32, 128>}, {pipeline_mode = #tpu.pipeline_mode<synchronous>, transform_indices = @transform_2, window_bounds = array<i64: 32, 128>}, {pipeline_mode = #tpu.pipeline_mode<synchronous>, transform_indices = @transform_3, window_bounds = array<i64: 1, 128>}, {pipeline_mode = #tpu.pipeline_mode<synchronous>, transform_indices = @transform_4, window_bounds = array<i64: 32, 128>}, {pipeline_mode = #tpu.pipeline_mode<synchronous>, transform_indices = @transform_5, window_bounds = array<i64: 1, 128>}, {transform_indices = @transform_6, window_bounds = array<i64: 2, 8, 128>}]} {
    %c0 = arith.constant 0 : index
    %c0_0 = arith.constant 0 : index
    %0 = vector.load %arg2[%c0, %c0_0] : memref<32x128xf32, #tpu.memory_space<vmem>>, vector<32x128xf32>
    %c0_1 = arith.constant 0 : index
    %c0_2 = arith.constant 0 : index
    %1 = vector.load %arg4[%c0_1, %c0_2] : memref<1x128xf32, #tpu.memory_space<vmem>>, vector<1x128xf32>
    %c0_i32 = arith.constant 0 : i32
    %2 = arith.index_cast %c0_i32 : i32 to index
    %c0_3 = arith.constant 0 : index
    %c0_4 = arith.constant 0 : index
    %3 = vector.load %arg1[%2, %c0_3, %c0_4] : memref<8x2x32xf32, #tpu.memory_space<vmem>>, vector<1x2x32xf32>
    %4 = vector.shape_cast %3 : vector<1x2x32xf32> to vector<2x32xf32>
    %cst = arith.constant dense<0.000000e+00> : vector<2x128xf32>
    %5 = tpu.matmul %4, %0, %cst {dimension_numbers = #tpu.dot_dimension_numbers<[1], [0], [0], [1], [0, 0, 1, 1], [], []>} : vector<2x32xf32>, vector<32x128xf32>, vector<2x128xf32> -> vector<2x128xf32>
    %6 = vector.broadcast %1 : vector<1x128xf32> to vector<2x128xf32>
    %7 = arith.addf %5, %6 : vector<2x128xf32>
    %8 = arith.index_cast %c0_i32 : i32 to index
    %c0_5 = arith.constant 0 : index
    %c0_6 = arith.constant 0 : index
    %9 = vector.load %arg8[%8, %c0_5, %c0_6] : memref<8x2x128xf32, #tpu.memory_space<vmem>>, vector<1x2x128xf32>
    %10 = vector.shape_cast %9 : vector<1x2x128xf32> to vector<2x128xf32>
    %11 = vector.shape_cast %7 : vector<2x128xf32> to vector<1x2x128xf32>
    tpu.vector_store %arg8[%8, %c0_5, %c0_6], %11 {strides = array<i32>} : memref<8x2x128xf32, #tpu.memory_space<vmem>>, vector<1x2x128xf32>,
    %c1_i32 = arith.constant 1 : i32
    %12 = arith.index_cast %c1_i32 : i32 to index
    %c0_7 = arith.constant 0 : index
    %c0_8 = arith.constant 0 : index
    %13 = vector.load %arg1[%12, %c0_7, %c0_8] : memref<8x2x32xf32, #tpu.memory_space<vmem>>, vector<1x2x32xf32>
    %14 = vector.shape_cast %13 : vector<1x2x32xf32> to vector<2x32xf32>
    %cst_9 = arith.constant dense<0.000000e+00> : vector<2x128xf32>
    %15 = tpu.matmul %14, %0, %cst_9 {dimension_numbers = #tpu.dot_dimension_numbers<[1], [0], [0], [1], [0, 0, 1, 1], [], []>} : vector<2x32xf32>, vector<32x128xf32>, vector<2x128xf32> -> vector<2x128xf32>
    %16 = vector.broadcast %1 : vector<1x128xf32> to vector<2x128xf32>
    %17 = arith.addf %15, %16 : vector<2x128xf32>
    %18 = arith.index_cast %c1_i32 : i32 to index
    %c0_10 = arith.constant 0 : index
    %c0_11 = arith.constant 0 : index
    %19 = vector.load %arg8[%18, %c0_10, %c0_11] : memref<8x2x128xf32, #tpu.memory_space<vmem>>, vector<1x2x128xf32>
    %20 = vector.shape_cast %19 : vector<1x2x128xf32> to vector<2x128xf32>
    %21 = vector.shape_cast %17 : vector<2x128xf32> to vector<1x2x128xf32>
    tpu.vector_store %arg8[%18, %c0_10, %c0_11], %21 {strides = array<i32>} : memref<8x2x128xf32, #tpu.memory_space<vmem>>, vector<1x2x128xf32>,
    %c2_i32 = arith.constant 2 : i32
    %22 = arith.index_cast %c2_i32 : i32 to index
    %c0_12 = arith.constant 0 : index
    %c0_13 = arith.constant 0 : index
    %23 = vector.load %arg1[%22, %c0_12, %c0_13] : memref<8x2x32xf32, #tpu.memory_space<vmem>>, vector<1x2x32xf32>
    %24 = vector.shape_cast %23 : vector<1x2x32xf32> to vector<2x32xf32>
    %cst_14 = arith.constant dense<0.000000e+00> : vector<2x128xf32>
    %25 = tpu.matmul %24, %0, %cst_14 {dimension_numbers = #tpu.dot_dimension_numbers<[1], [0], [0], [1], [0, 0, 1, 1], [], []>} : vector<2x32xf32>, vector<32x128xf32>, vector<2x128xf32> -> vector<2x128xf32>
    %26 = vector.broadcast %1 : vector<1x128xf32> to vector<2x128xf32>
    %27 = arith.addf %25, %26 : vector<2x128xf32>
    %28 = arith.index_cast %c2_i32 : i32 to index
    %c0_15 = arith.constant 0 : index
    %c0_16 = arith.constant 0 : index
    %29 = vector.load %arg8[%28, %c0_15, %c0_16] : memref<8x2x128xf32, #tpu.memory_space<vmem>>, vector<1x2x128xf32>
    %30 = vector.shape_cast %29 : vector<1x2x128xf32> to vector<2x128xf32>
    %31 = vector.shape_cast %27 : vector<2x128xf32> to vector<1x2x128xf32>
    tpu.vector_store %arg8[%28, %c0_15, %c0_16], %31 {strides = array<i32>} : memref<8x2x128xf32, #tpu.memory_space<vmem>>, vector<1x2x128xf32>,
    %c3_i32 = arith.constant 3 : i32
    %32 = arith.index_cast %c3_i32 : i32 to index
    %c0_17 = arith.constant 0 : index
    %c0_18 = arith.constant 0 : index
    %33 = vector.load %arg1[%32, %c0_17, %c0_18] : memref<8x2x32xf32, #tpu.memory_space<vmem>>, vector<1x2x32xf32>
    %34 = vector.shape_cast %33 : vector<1x2x32xf32> to vector<2x32xf32>
    %cst_19 = arith.constant dense<0.000000e+00> : vector<2x128xf32>
    %35 = tpu.matmul %34, %0, %cst_19 {dimension_numbers = #tpu.dot_dimension_numbers<[1], [0], [0], [1], [0, 0, 1, 1], [], []>} : vector<2x32xf32>, vector<32x128xf32>, vector<2x128xf32> -> vector<2x128xf32>
    %36 = vector.broadcast %1 : vector<1x128xf32> to vector<2x128xf32>
    %37 = arith.addf %35, %36 : vector<2x128xf32>
    %38 = arith.index_cast %c3_i32 : i32 to index
    %c0_20 = arith.constant 0 : index
    %c0_21 = arith.constant 0 : index
    %39 = vector.load %arg8[%38, %c0_20, %c0_21] : memref<8x2x128xf32, #tpu.memory_space<vmem>>, vector<1x2x128xf32>
    %40 = vector.shape_cast %39 : vector<1x2x128xf32> to vector<2x128xf32>
    %41 = vector.shape_cast %37 : vector<2x128xf32> to vector<1x2x128xf32>
    tpu.vector_store %arg8[%38, %c0_20, %c0_21], %41 {strides = array<i32>} : memref<8x2x128xf32, #tpu.memory_space<vmem>>, vector<1x2x128xf32>,
    %c4_i32 = arith.constant 4 : i32
    %42 = arith.index_cast %c4_i32 : i32 to index
    %c0_22 = arith.constant 0 : index
    %c0_23 = arith.constant 0 : index
    %43 = vector.load %arg1[%42, %c0_22, %c0_23] : memref<8x2x32xf32, #tpu.memory_space<vmem>>, vector<1x2x32xf32>
    %44 = vector.shape_cast %43 : vector<1x2x32xf32> to vector<2x32xf32>
    %cst_24 = arith.constant dense<0.000000e+00> : vector<2x128xf32>
    %45 = tpu.matmul %44, %0, %cst_24 {dimension_numbers = #tpu.dot_dimension_numbers<[1], [0], [0], [1], [0, 0, 1, 1], [], []>} : vector<2x32xf32>, vector<32x128xf32>, vector<2x128xf32> -> vector<2x128xf32>
    %46 = vector.broadcast %1 : vector<1x128xf32> to vector<2x128xf32>
    %47 = arith.addf %45, %46 : vector<2x128xf32>
    %48 = arith.index_cast %c4_i32 : i32 to index
    %c0_25 = arith.constant 0 : index
    %c0_26 = arith.constant 0 : index
    %49 = vector.load %arg8[%48, %c0_25, %c0_26] : memref<8x2x128xf32, #tpu.memory_space<vmem>>, vector<1x2x128xf32>
    %50 = vector.shape_cast %49 : vector<1x2x128xf32> to vector<2x128xf32>
    %51 = vector.shape_cast %47 : vector<2x128xf32> to vector<1x2x128xf32>
    tpu.vector_store %arg8[%48, %c0_25, %c0_26], %51 {strides = array<i32>} : memref<8x2x128xf32, #tpu.memory_space<vmem>>, vector<1x2x128xf32>,
    %c5_i32 = arith.constant 5 : i32
    %52 = arith.index_cast %c5_i32 : i32 to index
    %c0_27 = arith.constant 0 : index
    %c0_28 = arith.constant 0 : index
    %53 = vector.load %arg1[%52, %c0_27, %c0_28] : memref<8x2x32xf32, #tpu.memory_space<vmem>>, vector<1x2x32xf32>
    %54 = vector.shape_cast %53 : vector<1x2x32xf32> to vector<2x32xf32>
    %cst_29 = arith.constant dense<0.000000e+00> : vector<2x128xf32>
    %55 = tpu.matmul %54, %0, %cst_29 {dimension_numbers = #tpu.dot_dimension_numbers<[1], [0], [0], [1], [0, 0, 1, 1], [], []>} : vector<2x32xf32>, vector<32x128xf32>, vector<2x128xf32> -> vector<2x128xf32>
    %56 = vector.broadcast %1 : vector<1x128xf32> to vector<2x128xf32>
    %57 = arith.addf %55, %56 : vector<2x128xf32>
    %58 = arith.index_cast %c5_i32 : i32 to index
    %c0_30 = arith.constant 0 : index
    %c0_31 = arith.constant 0 : index
    %59 = vector.load %arg8[%58, %c0_30, %c0_31] : memref<8x2x128xf32, #tpu.memory_space<vmem>>, vector<1x2x128xf32>
    %60 = vector.shape_cast %59 : vector<1x2x128xf32> to vector<2x128xf32>
    %61 = vector.shape_cast %57 : vector<2x128xf32> to vector<1x2x128xf32>
    tpu.vector_store %arg8[%58, %c0_30, %c0_31], %61 {strides = array<i32>} : memref<8x2x128xf32, #tpu.memory_space<vmem>>, vector<1x2x128xf32>,
    %c6_i32 = arith.constant 6 : i32
    %62 = arith.index_cast %c6_i32 : i32 to index
    %c0_32 = arith.constant 0 : index
    %c0_33 = arith.constant 0 : index
    %63 = vector.load %arg1[%62, %c0_32, %c0_33] : memref<8x2x32xf32, #tpu.memory_space<vmem>>, vector<1x2x32xf32>
    %64 = vector.shape_cast %63 : vector<1x2x32xf32> to vector<2x32xf32>
    %cst_34 = arith.constant dense<0.000000e+00> : vector<2x128xf32>
    %65 = tpu.matmul %64, %0, %cst_34 {dimension_numbers = #tpu.dot_dimension_numbers<[1], [0], [0], [1], [0, 0, 1, 1], [], []>} : vector<2x32xf32>, vector<32x128xf32>, vector<2x128xf32> -> vector<2x128xf32>
    %66 = vector.broadcast %1 : vector<1x128xf32> to vector<2x128xf32>
    %67 = arith.addf %65, %66 : vector<2x128xf32>
    %68 = arith.index_cast %c6_i32 : i32 to index
    %c0_35 = arith.constant 0 : index
    %c0_36 = arith.constant 0 : index
    %69 = vector.load %arg8[%68, %c0_35, %c0_36] : memref<8x2x128xf32, #tpu.memory_space<vmem>>, vector<1x2x128xf32>
    %70 = vector.shape_cast %69 : vector<1x2x128xf32> to vector<2x128xf32>
    %71 = vector.shape_cast %67 : vector<2x128xf32> to vector<1x2x128xf32>
    tpu.vector_store %arg8[%68, %c0_35, %c0_36], %71 {strides = array<i32>} : memref<8x2x128xf32, #tpu.memory_space<vmem>>, vector<1x2x128xf32>,
    %c7_i32 = arith.constant 7 : i32
    %72 = arith.index_cast %c7_i32 : i32 to index
    %c0_37 = arith.constant 0 : index
    %c0_38 = arith.constant 0 : index
    %73 = vector.load %arg1[%72, %c0_37, %c0_38] : memref<8x2x32xf32, #tpu.memory_space<vmem>>, vector<1x2x32xf32>
    %74 = vector.shape_cast %73 : vector<1x2x32xf32> to vector<2x32xf32>
    %cst_39 = arith.constant dense<0.000000e+00> : vector<2x128xf32>
    %75 = tpu.matmul %74, %0, %cst_39 {dimension_numbers = #tpu.dot_dimension_numbers<[1], [0], [0], [1], [0, 0, 1, 1], [], []>} : vector<2x32xf32>, vector<32x128xf32>, vector<2x128xf32> -> vector<2x128xf32>
    %76 = vector.broadcast %1 : vector<1x128xf32> to vector<2x128xf32>
    %77 = arith.addf %75, %76 : vector<2x128xf32>
    %78 = arith.index_cast %c7_i32 : i32 to index
    %c0_40 = arith.constant 0 : index
    %c0_41 = arith.constant 0 : index
    %79 = vector.load %arg8[%78, %c0_40, %c0_41] : memref<8x2x128xf32, #tpu.memory_space<vmem>>, vector<1x2x128xf32>
    %80 = vector.shape_cast %79 : vector<1x2x128xf32> to vector<2x128xf32>
    %81 = vector.shape_cast %77 : vector<2x128xf32> to vector<1x2x128xf32>
    tpu.vector_store %arg8[%78, %c0_40, %c0_41], %81 {strides = array<i32>} : memref<8x2x128xf32, #tpu.memory_space<vmem>>, vector<1x2x128xf32>,
    %c8_i32 = arith.constant 8 : i32
    %c0_42 = arith.constant 0 : index
    %c0_43 = arith.constant 0 : index
    %82 = vector.load %arg3[%c0_42, %c0_43] : memref<32x128xf32, #tpu.memory_space<vmem>>, vector<32x128xf32>
    %cst_44 = arith.constant 0.000000e+00 : f32
    %83 = vector.broadcast %cst_44 : f32 to vector<2x32xf32>
    %cst_45 = arith.constant 0.000000e+00 : f32
    %84 = vector.broadcast %cst_45 : f32 to vector<2x32xf32>
    %c0_i32_46 = arith.constant 0 : i32
    %85 = arith.index_cast %c0_i32_46 : i32 to index
    %c0_47 = arith.constant 0 : index
    %c0_48 = arith.constant 0 : index
    %86 = vector.load %arg8[%85, %c0_47, %c0_48] : memref<8x2x128xf32, #tpu.memory_space<vmem>>, vector<1x2x128xf32>
    %87 = vector.shape_cast %86 : vector<1x2x128xf32> to vector<2x128xf32>
    %cst_49 = arith.constant dense<0.000000e+00> : vector<2x128xf32>
    %88 = tpu.matmul %83, %82, %cst_49 {dimension_numbers = #tpu.dot_dimension_numbers<[1], [0], [0], [1], [0, 0, 1, 1], [], []>} : vector<2x32xf32>, vector<32x128xf32>, vector<2x128xf32> -> vector<2x128xf32>
    %89 = arith.addf %87, %88 : vector<2x128xf32>
    %90 = vector.extract_strided_slice %89 {offsets = [0, 0], sizes = [2, 64], strides = [1, 1]} : vector<2x128xf32> to vector<2x64xf32>
    %91 = arith.negf %90 : vector<2x64xf32>
    %92 = math.exp %91 : vector<2x64xf32>
    %cst_50 = arith.constant 1.000000e+00 : f32
    %93 = vector.broadcast %cst_50 : f32 to vector<2x64xf32>
    %94 = arith.addf %93, %92 : vector<2x64xf32>
    %95 = arith.divf %93, %94 : vector<2x64xf32>
    %96 = vector.extract_strided_slice %89 {offsets = [0, 64], sizes = [2, 32], strides = [1, 1]} : vector<2x128xf32> to vector<2x32xf32>
    %97 = math.tanh %96 : vector<2x32xf32>
    %98 = vector.extract_strided_slice %89 {offsets = [0, 96], sizes = [2, 32], strides = [1, 1]} : vector<2x128xf32> to vector<2x32xf32>
    %99 = arith.negf %98 : vector<2x32xf32>
    %100 = math.exp %99 : vector<2x32xf32>
    %cst_51 = arith.constant 1.000000e+00 : f32
    %101 = vector.broadcast %cst_51 : f32 to vector<2x32xf32>
    %102 = arith.addf %101, %100 : vector<2x32xf32>
    %103 = arith.divf %101, %102 : vector<2x32xf32>
    %104 = vector.extract_strided_slice %95 {offsets = [0, 32], sizes = [2, 32], strides = [1, 1]} : vector<2x64xf32> to vector<2x32xf32>
    %105 = arith.mulf %104, %84 : vector<2x32xf32>
    %106 = vector.extract_strided_slice %95 {offsets = [0, 0], sizes = [2, 32], strides = [1, 1]} : vector<2x64xf32> to vector<2x32xf32>
    %107 = arith.mulf %106, %97 : vector<2x32xf32>
    %108 = arith.addf %105, %107 : vector<2x32xf32>
    %109 = math.tanh %108 : vector<2x32xf32>
    %110 = arith.mulf %103, %109 : vector<2x32xf32>
    %111 = arith.index_cast %c0_i32_46 : i32 to index
    %c0_52 = arith.constant 0 : index
    %c0_53 = arith.constant 0 : index
    %112 = vector.load %arg9[%111, %c0_52, %c0_53] : memref<8x2x32xf32, #tpu.memory_space<vmem>>, vector<1x2x32xf32>
    %113 = vector.shape_cast %112 : vector<1x2x32xf32> to vector<2x32xf32>
    %114 = vector.shape_cast %110 : vector<2x32xf32> to vector<1x2x32xf32>
    tpu.vector_store %arg9[%111, %c0_52, %c0_53], %114 {strides = array<i32>} : memref<8x2x32xf32, #tpu.memory_space<vmem>>, vector<1x2x32xf32>,
    %c1_i32_54 = arith.constant 1 : i32
    %115 = arith.index_cast %c1_i32_54 : i32 to index
    %c0_55 = arith.constant 0 : index
    %c0_56 = arith.constant 0 : index
    %116 = vector.load %arg8[%115, %c0_55, %c0_56] : memref<8x2x128xf32, #tpu.memory_space<vmem>>, vector<1x2x128xf32>
    %117 = vector.shape_cast %116 : vector<1x2x128xf32> to vector<2x128xf32>
    %cst_57 = arith.constant dense<0.000000e+00> : vector<2x128xf32>
    %118 = tpu.matmul %110, %82, %cst_57 {dimension_numbers = #tpu.dot_dimension_numbers<[1], [0], [0], [1], [0, 0, 1, 1], [], []>} : vector<2x32xf32>, vector<32x128xf32>, vector<2x128xf32> -> vector<2x128xf32>
    %119 = arith.addf %117, %118 : vector<2x128xf32>
    %120 = vector.extract_strided_slice %119 {offsets = [0, 0], sizes = [2, 64], strides = [1, 1]} : vector<2x128xf32> to vector<2x64xf32>
    %121 = arith.negf %120 : vector<2x64xf32>
    %122 = math.exp %121 : vector<2x64xf32>
    %cst_58 = arith.constant 1.000000e+00 : f32
    %123 = vector.broadcast %cst_58 : f32 to vector<2x64xf32>
    %124 = arith.addf %123, %122 : vector<2x64xf32>
    %125 = arith.divf %123, %124 : vector<2x64xf32>
    %126 = vector.extract_strided_slice %119 {offsets = [0, 64], sizes = [2, 32], strides = [1, 1]} : vector<2x128xf32> to vector<2x32xf32>
    %127 = math.tanh %126 : vector<2x32xf32>
    %128 = vector.extract_strided_slice %119 {offsets = [0, 96], sizes = [2, 32], strides = [1, 1]} : vector<2x128xf32> to vector<2x32xf32>
    %129 = arith.negf %128 : vector<2x32xf32>
    %130 = math.exp %129 : vector<2x32xf32>
    %cst_59 = arith.constant 1.000000e+00 : f32
    %131 = vector.broadcast %cst_59 : f32 to vector<2x32xf32>
    %132 = arith.addf %131, %130 : vector<2x32xf32>
    %133 = arith.divf %131, %132 : vector<2x32xf32>
    %134 = vector.extract_strided_slice %125 {offsets = [0, 32], sizes = [2, 32], strides = [1, 1]} : vector<2x64xf32> to vector<2x32xf32>
    %135 = arith.mulf %134, %108 : vector<2x32xf32>
    %136 = vector.extract_strided_slice %125 {offsets = [0, 0], sizes = [2, 32], strides = [1, 1]} : vector<2x64xf32> to vector<2x32xf32>
    %137 = arith.mulf %136, %127 : vector<2x32xf32>
    %138 = arith.addf %135, %137 : vector<2x32xf32>
    %139 = math.tanh %138 : vector<2x32xf32>
    %140 = arith.mulf %133, %139 : vector<2x32xf32>
    %141 = arith.index_cast %c1_i32_54 : i32 to index
    %c0_60 = arith.constant 0 : index
    %c0_61 = arith.constant 0 : index
    %142 = vector.load %arg9[%141, %c0_60, %c0_61] : memref<8x2x32xf32, #tpu.memory_space<vmem>>, vector<1x2x32xf32>
    %143 = vector.shape_cast %142 : vector<1x2x32xf32> to vector<2x32xf32>
    %144 = vector.shape_cast %140 : vector<2x32xf32> to vector<1x2x32xf32>
    tpu.vector_store %arg9[%141, %c0_60, %c0_61], %144 {strides = array<i32>} : memref<8x2x32xf32, #tpu.memory_space<vmem>>, vector<1x2x32xf32>,
    %c2_i32_62 = arith.constant 2 : i32
    %145 = arith.index_cast %c2_i32_62 : i32 to index
    %c0_63 = arith.constant 0 : index
    %c0_64 = arith.constant 0 : index
    %146 = vector.load %arg8[%145, %c0_63, %c0_64] : memref<8x2x128xf32, #tpu.memory_space<vmem>>, vector<1x2x128xf32>
    %147 = vector.shape_cast %146 : vector<1x2x128xf32> to vector<2x128xf32>
    %cst_65 = arith.constant dense<0.000000e+00> : vector<2x128xf32>
    %148 = tpu.matmul %140, %82, %cst_65 {dimension_numbers = #tpu.dot_dimension_numbers<[1], [0], [0], [1], [0, 0, 1, 1], [], []>} : vector<2x32xf32>, vector<32x128xf32>, vector<2x128xf32> -> vector<2x128xf32>
    %149 = arith.addf %147, %148 : vector<2x128xf32>
    %150 = vector.extract_strided_slice %149 {offsets = [0, 0], sizes = [2, 64], strides = [1, 1]} : vector<2x128xf32> to vector<2x64xf32>
    %151 = arith.negf %150 : vector<2x64xf32>
    %152 = math.exp %151 : vector<2x64xf32>
    %cst_66 = arith.constant 1.000000e+00 : f32
    %153 = vector.broadcast %cst_66 : f32 to vector<2x64xf32>
    %154 = arith.addf %153, %152 : vector<2x64xf32>
    %155 = arith.divf %153, %154 : vector<2x64xf32>
    %156 = vector.extract_strided_slice %149 {offsets = [0, 64], sizes = [2, 32], strides = [1, 1]} : vector<2x128xf32> to vector<2x32xf32>
    %157 = math.tanh %156 : vector<2x32xf32>
    %158 = vector.extract_strided_slice %149 {offsets = [0, 96], sizes = [2, 32], strides = [1, 1]} : vector<2x128xf32> to vector<2x32xf32>
    %159 = arith.negf %158 : vector<2x32xf32>
    %160 = math.exp %159 : vector<2x32xf32>
    %cst_67 = arith.constant 1.000000e+00 : f32
    %161 = vector.broadcast %cst_67 : f32 to vector<2x32xf32>
    %162 = arith.addf %161, %160 : vector<2x32xf32>
    %163 = arith.divf %161, %162 : vector<2x32xf32>
    %164 = vector.extract_strided_slice %155 {offsets = [0, 32], sizes = [2, 32], strides = [1, 1]} : vector<2x64xf32> to vector<2x32xf32>
    %165 = arith.mulf %164, %138 : vector<2x32xf32>
    %166 = vector.extract_strided_slice %155 {offsets = [0, 0], sizes = [2, 32], strides = [1, 1]} : vector<2x64xf32> to vector<2x32xf32>
    %167 = arith.mulf %166, %157 : vector<2x32xf32>
    %168 = arith.addf %165, %167 : vector<2x32xf32>
    %169 = math.tanh %168 : vector<2x32xf32>
    %170 = arith.mulf %163, %169 : vector<2x32xf32>
    %171 = arith.index_cast %c2_i32_62 : i32 to index
    %c0_68 = arith.constant 0 : index
    %c0_69 = arith.constant 0 : index
    %172 = vector.load %arg9[%171, %c0_68, %c0_69] : memref<8x2x32xf32, #tpu.memory_space<vmem>>, vector<1x2x32xf32>
    %173 = vector.shape_cast %172 : vector<1x2x32xf32> to vector<2x32xf32>
    %174 = vector.shape_cast %170 : vector<2x32xf32> to vector<1x2x32xf32>
    tpu.vector_store %arg9[%171, %c0_68, %c0_69], %174 {strides = array<i32>} : memref<8x2x32xf32, #tpu.memory_space<vmem>>, vector<1x2x32xf32>,
    %c3_i32_70 = arith.constant 3 : i32
    %175 = arith.index_cast %c3_i32_70 : i32 to index
    %c0_71 = arith.constant 0 : index
    %c0_72 = arith.constant 0 : index
    %176 = vector.load %arg8[%175, %c0_71, %c0_72] : memref<8x2x128xf32, #tpu.memory_space<vmem>>, vector<1x2x128xf32>
    %177 = vector.shape_cast %176 : vector<1x2x128xf32> to vector<2x128xf32>
    %cst_73 = arith.constant dense<0.000000e+00> : vector<2x128xf32>
    %178 = tpu.matmul %170, %82, %cst_73 {dimension_numbers = #tpu.dot_dimension_numbers<[1], [0], [0], [1], [0, 0, 1, 1], [], []>} : vector<2x32xf32>, vector<32x128xf32>, vector<2x128xf32> -> vector<2x128xf32>
    %179 = arith.addf %177, %178 : vector<2x128xf32>
    %180 = vector.extract_strided_slice %179 {offsets = [0, 0], sizes = [2, 64], strides = [1, 1]} : vector<2x128xf32> to vector<2x64xf32>
    %181 = arith.negf %180 : vector<2x64xf32>
    %182 = math.exp %181 : vector<2x64xf32>
    %cst_74 = arith.constant 1.000000e+00 : f32
    %183 = vector.broadcast %cst_74 : f32 to vector<2x64xf32>
    %184 = arith.addf %183, %182 : vector<2x64xf32>
    %185 = arith.divf %183, %184 : vector<2x64xf32>
    %186 = vector.extract_strided_slice %179 {offsets = [0, 64], sizes = [2, 32], strides = [1, 1]} : vector<2x128xf32> to vector<2x32xf32>
    %187 = math.tanh %186 : vector<2x32xf32>
    %188 = vector.extract_strided_slice %179 {offsets = [0, 96], sizes = [2, 32], strides = [1, 1]} : vector<2x128xf32> to vector<2x32xf32>
    %189 = arith.negf %188 : vector<2x32xf32>
    %190 = math.exp %189 : vector<2x32xf32>
    %cst_75 = arith.constant 1.000000e+00 : f32
    %191 = vector.broadcast %cst_75 : f32 to vector<2x32xf32>
    %192 = arith.addf %191, %190 : vector<2x32xf32>
    %193 = arith.divf %191, %192 : vector<2x32xf32>
    %194 = vector.extract_strided_slice %185 {offsets = [0, 32], sizes = [2, 32], strides = [1, 1]} : vector<2x64xf32> to vector<2x32xf32>
    %195 = arith.mulf %194, %168 : vector<2x32xf32>
    %196 = vector.extract_strided_slice %185 {offsets = [0, 0], sizes = [2, 32], strides = [1, 1]} : vector<2x64xf32> to vector<2x32xf32>
    %197 = arith.mulf %196, %187 : vector<2x32xf32>
    %198 = arith.addf %195, %197 : vector<2x32xf32>
    %199 = math.tanh %198 : vector<2x32xf32>
    %200 = arith.mulf %193, %199 : vector<2x32xf32>
    %201 = arith.index_cast %c3_i32_70 : i32 to index
    %c0_76 = arith.constant 0 : index
    %c0_77 = arith.constant 0 : index
    %202 = vector.load %arg9[%201, %c0_76, %c0_77] : memref<8x2x32xf32, #tpu.memory_space<vmem>>, vector<1x2x32xf32>
    %203 = vector.shape_cast %202 : vector<1x2x32xf32> to vector<2x32xf32>
    %204 = vector.shape_cast %200 : vector<2x32xf32> to vector<1x2x32xf32>
    tpu.vector_store %arg9[%201, %c0_76, %c0_77], %204 {strides = array<i32>} : memref<8x2x32xf32, #tpu.memory_space<vmem>>, vector<1x2x32xf32>,
    %c4_i32_78 = arith.constant 4 : i32
    %205 = arith.index_cast %c4_i32_78 : i32 to index
    %c0_79 = arith.constant 0 : index
    %c0_80 = arith.constant 0 : index
    %206 = vector.load %arg8[%205, %c0_79, %c0_80] : memref<8x2x128xf32, #tpu.memory_space<vmem>>, vector<1x2x128xf32>
    %207 = vector.shape_cast %206 : vector<1x2x128xf32> to vector<2x128xf32>
    %cst_81 = arith.constant dense<0.000000e+00> : vector<2x128xf32>
    %208 = tpu.matmul %200, %82, %cst_81 {dimension_numbers = #tpu.dot_dimension_numbers<[1], [0], [0], [1], [0, 0, 1, 1], [], []>} : vector<2x32xf32>, vector<32x128xf32>, vector<2x128xf32> -> vector<2x128xf32>
    %209 = arith.addf %207, %208 : vector<2x128xf32>
    %210 = vector.extract_strided_slice %209 {offsets = [0, 0], sizes = [2, 64], strides = [1, 1]} : vector<2x128xf32> to vector<2x64xf32>
    %211 = arith.negf %210 : vector<2x64xf32>
    %212 = math.exp %211 : vector<2x64xf32>
    %cst_82 = arith.constant 1.000000e+00 : f32
    %213 = vector.broadcast %cst_82 : f32 to vector<2x64xf32>
    %214 = arith.addf %213, %212 : vector<2x64xf32>
    %215 = arith.divf %213, %214 : vector<2x64xf32>
    %216 = vector.extract_strided_slice %209 {offsets = [0, 64], sizes = [2, 32], strides = [1, 1]} : vector<2x128xf32> to vector<2x32xf32>
    %217 = math.tanh %216 : vector<2x32xf32>
    %218 = vector.extract_strided_slice %209 {offsets = [0, 96], sizes = [2, 32], strides = [1, 1]} : vector<2x128xf32> to vector<2x32xf32>
    %219 = arith.negf %218 : vector<2x32xf32>
    %220 = math.exp %219 : vector<2x32xf32>
    %cst_83 = arith.constant 1.000000e+00 : f32
    %221 = vector.broadcast %cst_83 : f32 to vector<2x32xf32>
    %222 = arith.addf %221, %220 : vector<2x32xf32>
    %223 = arith.divf %221, %222 : vector<2x32xf32>
    %224 = vector.extract_strided_slice %215 {offsets = [0, 32], sizes = [2, 32], strides = [1, 1]} : vector<2x64xf32> to vector<2x32xf32>
    %225 = arith.mulf %224, %198 : vector<2x32xf32>
    %226 = vector.extract_strided_slice %215 {offsets = [0, 0], sizes = [2, 32], strides = [1, 1]} : vector<2x64xf32> to vector<2x32xf32>
    %227 = arith.mulf %226, %217 : vector<2x32xf32>
    %228 = arith.addf %225, %227 : vector<2x32xf32>
    %229 = math.tanh %228 : vector<2x32xf32>
    %230 = arith.mulf %223, %229 : vector<2x32xf32>
    %231 = arith.index_cast %c4_i32_78 : i32 to index
    %c0_84 = arith.constant 0 : index
    %c0_85 = arith.constant 0 : index
    %232 = vector.load %arg9[%231, %c0_84, %c0_85] : memref<8x2x32xf32, #tpu.memory_space<vmem>>, vector<1x2x32xf32>
    %233 = vector.shape_cast %232 : vector<1x2x32xf32> to vector<2x32xf32>
    %234 = vector.shape_cast %230 : vector<2x32xf32> to vector<1x2x32xf32>
    tpu.vector_store %arg9[%231, %c0_84, %c0_85], %234 {strides = array<i32>} : memref<8x2x32xf32, #tpu.memory_space<vmem>>, vector<1x2x32xf32>,
    %c5_i32_86 = arith.constant 5 : i32
    %235 = arith.index_cast %c5_i32_86 : i32 to index
    %c0_87 = arith.constant 0 : index
    %c0_88 = arith.constant 0 : index
    %236 = vector.load %arg8[%235, %c0_87, %c0_88] : memref<8x2x128xf32, #tpu.memory_space<vmem>>, vector<1x2x128xf32>
    %237 = vector.shape_cast %236 : vector<1x2x128xf32> to vector<2x128xf32>
    %cst_89 = arith.constant dense<0.000000e+00> : vector<2x128xf32>
    %238 = tpu.matmul %230, %82, %cst_89 {dimension_numbers = #tpu.dot_dimension_numbers<[1], [0], [0], [1], [0, 0, 1, 1], [], []>} : vector<2x32xf32>, vector<32x128xf32>, vector<2x128xf32> -> vector<2x128xf32>
    %239 = arith.addf %237, %238 : vector<2x128xf32>
    %240 = vector.extract_strided_slice %239 {offsets = [0, 0], sizes = [2, 64], strides = [1, 1]} : vector<2x128xf32> to vector<2x64xf32>
    %241 = arith.negf %240 : vector<2x64xf32>
    %242 = math.exp %241 : vector<2x64xf32>
    %cst_90 = arith.constant 1.000000e+00 : f32
    %243 = vector.broadcast %cst_90 : f32 to vector<2x64xf32>
    %244 = arith.addf %243, %242 : vector<2x64xf32>
    %245 = arith.divf %243, %244 : vector<2x64xf32>
    %246 = vector.extract_strided_slice %239 {offsets = [0, 64], sizes = [2, 32], strides = [1, 1]} : vector<2x128xf32> to vector<2x32xf32>
    %247 = math.tanh %246 : vector<2x32xf32>
    %248 = vector.extract_strided_slice %239 {offsets = [0, 96], sizes = [2, 32], strides = [1, 1]} : vector<2x128xf32> to vector<2x32xf32>
    %249 = arith.negf %248 : vector<2x32xf32>
    %250 = math.exp %249 : vector<2x32xf32>
    %cst_91 = arith.constant 1.000000e+00 : f32
    %251 = vector.broadcast %cst_91 : f32 to vector<2x32xf32>
    %252 = arith.addf %251, %250 : vector<2x32xf32>
    %253 = arith.divf %251, %252 : vector<2x32xf32>
    %254 = vector.extract_strided_slice %245 {offsets = [0, 32], sizes = [2, 32], strides = [1, 1]} : vector<2x64xf32> to vector<2x32xf32>
    %255 = arith.mulf %254, %228 : vector<2x32xf32>
    %256 = vector.extract_strided_slice %245 {offsets = [0, 0], sizes = [2, 32], strides = [1, 1]} : vector<2x64xf32> to vector<2x32xf32>
    %257 = arith.mulf %256, %247 : vector<2x32xf32>
    %258 = arith.addf %255, %257 : vector<2x32xf32>
    %259 = math.tanh %258 : vector<2x32xf32>
    %260 = arith.mulf %253, %259 : vector<2x32xf32>
    %261 = arith.index_cast %c5_i32_86 : i32 to index
    %c0_92 = arith.constant 0 : index
    %c0_93 = arith.constant 0 : index
    %262 = vector.load %arg9[%261, %c0_92, %c0_93] : memref<8x2x32xf32, #tpu.memory_space<vmem>>, vector<1x2x32xf32>
    %263 = vector.shape_cast %262 : vector<1x2x32xf32> to vector<2x32xf32>
    %264 = vector.shape_cast %260 : vector<2x32xf32> to vector<1x2x32xf32>
    tpu.vector_store %arg9[%261, %c0_92, %c0_93], %264 {strides = array<i32>} : memref<8x2x32xf32, #tpu.memory_space<vmem>>, vector<1x2x32xf32>,
    %c6_i32_94 = arith.constant 6 : i32
    %265 = arith.index_cast %c6_i32_94 : i32 to index
    %c0_95 = arith.constant 0 : index
    %c0_96 = arith.constant 0 : index
    %266 = vector.load %arg8[%265, %c0_95, %c0_96] : memref<8x2x128xf32, #tpu.memory_space<vmem>>, vector<1x2x128xf32>
    %267 = vector.shape_cast %266 : vector<1x2x128xf32> to vector<2x128xf32>
    %cst_97 = arith.constant dense<0.000000e+00> : vector<2x128xf32>
    %268 = tpu.matmul %260, %82, %cst_97 {dimension_numbers = #tpu.dot_dimension_numbers<[1], [0], [0], [1], [0, 0, 1, 1], [], []>} : vector<2x32xf32>, vector<32x128xf32>, vector<2x128xf32> -> vector<2x128xf32>
    %269 = arith.addf %267, %268 : vector<2x128xf32>
    %270 = vector.extract_strided_slice %269 {offsets = [0, 0], sizes = [2, 64], strides = [1, 1]} : vector<2x128xf32> to vector<2x64xf32>
    %271 = arith.negf %270 : vector<2x64xf32>
    %272 = math.exp %271 : vector<2x64xf32>
    %cst_98 = arith.constant 1.000000e+00 : f32
    %273 = vector.broadcast %cst_98 : f32 to vector<2x64xf32>
    %274 = arith.addf %273, %272 : vector<2x64xf32>
    %275 = arith.divf %273, %274 : vector<2x64xf32>
    %276 = vector.extract_strided_slice %269 {offsets = [0, 64], sizes = [2, 32], strides = [1, 1]} : vector<2x128xf32> to vector<2x32xf32>
    %277 = math.tanh %276 : vector<2x32xf32>
    %278 = vector.extract_strided_slice %269 {offsets = [0, 96], sizes = [2, 32], strides = [1, 1]} : vector<2x128xf32> to vector<2x32xf32>
    %279 = arith.negf %278 : vector<2x32xf32>
    %280 = math.exp %279 : vector<2x32xf32>
    %cst_99 = arith.constant 1.000000e+00 : f32
    %281 = vector.broadcast %cst_99 : f32 to vector<2x32xf32>
    %282 = arith.addf %281, %280 : vector<2x32xf32>
    %283 = arith.divf %281, %282 : vector<2x32xf32>
    %284 = vector.extract_strided_slice %275 {offsets = [0, 32], sizes = [2, 32], strides = [1, 1]} : vector<2x64xf32> to vector<2x32xf32>
    %285 = arith.mulf %284, %258 : vector<2x32xf32>
    %286 = vector.extract_strided_slice %275 {offsets = [0, 0], sizes = [2, 32], strides = [1, 1]} : vector<2x64xf32> to vector<2x32xf32>
    %287 = arith.mulf %286, %277 : vector<2x32xf32>
    %288 = arith.addf %285, %287 : vector<2x32xf32>
    %289 = math.tanh %288 : vector<2x32xf32>
    %290 = arith.mulf %283, %289 : vector<2x32xf32>
    %291 = arith.index_cast %c6_i32_94 : i32 to index
    %c0_100 = arith.constant 0 : index
    %c0_101 = arith.constant 0 : index
    %292 = vector.load %arg9[%291, %c0_100, %c0_101] : memref<8x2x32xf32, #tpu.memory_space<vmem>>, vector<1x2x32xf32>
    %293 = vector.shape_cast %292 : vector<1x2x32xf32> to vector<2x32xf32>
    %294 = vector.shape_cast %290 : vector<2x32xf32> to vector<1x2x32xf32>
    tpu.vector_store %arg9[%291, %c0_100, %c0_101], %294 {strides = array<i32>} : memref<8x2x32xf32, #tpu.memory_space<vmem>>, vector<1x2x32xf32>,
    %c7_i32_102 = arith.constant 7 : i32
    %295 = arith.index_cast %c7_i32_102 : i32 to index
    %c0_103 = arith.constant 0 : index
    %c0_104 = arith.constant 0 : index
    %296 = vector.load %arg8[%295, %c0_103, %c0_104] : memref<8x2x128xf32, #tpu.memory_space<vmem>>, vector<1x2x128xf32>
    %297 = vector.shape_cast %296 : vector<1x2x128xf32> to vector<2x128xf32>
    %cst_105 = arith.constant dense<0.000000e+00> : vector<2x128xf32>
    %298 = tpu.matmul %290, %82, %cst_105 {dimension_numbers = #tpu.dot_dimension_numbers<[1], [0], [0], [1], [0, 0, 1, 1], [], []>} : vector<2x32xf32>, vector<32x128xf32>, vector<2x128xf32> -> vector<2x128xf32>
    %299 = arith.addf %297, %298 : vector<2x128xf32>
    %300 = vector.extract_strided_slice %299 {offsets = [0, 0], sizes = [2, 64], strides = [1, 1]} : vector<2x128xf32> to vector<2x64xf32>
    %301 = arith.negf %300 : vector<2x64xf32>
    %302 = math.exp %301 : vector<2x64xf32>
    %cst_106 = arith.constant 1.000000e+00 : f32
    %303 = vector.broadcast %cst_106 : f32 to vector<2x64xf32>
    %304 = arith.addf %303, %302 : vector<2x64xf32>
    %305 = arith.divf %303, %304 : vector<2x64xf32>
    %306 = vector.extract_strided_slice %299 {offsets = [0, 64], sizes = [2, 32], strides = [1, 1]} : vector<2x128xf32> to vector<2x32xf32>
    %307 = math.tanh %306 : vector<2x32xf32>
    %308 = vector.extract_strided_slice %299 {offsets = [0, 96], sizes = [2, 32], strides = [1, 1]} : vector<2x128xf32> to vector<2x32xf32>
    %309 = arith.negf %308 : vector<2x32xf32>
    %310 = math.exp %309 : vector<2x32xf32>
    %cst_107 = arith.constant 1.000000e+00 : f32
    %311 = vector.broadcast %cst_107 : f32 to vector<2x32xf32>
    %312 = arith.addf %311, %310 : vector<2x32xf32>
    %313 = arith.divf %311, %312 : vector<2x32xf32>
    %314 = vector.extract_strided_slice %305 {offsets = [0, 32], sizes = [2, 32], strides = [1, 1]} : vector<2x64xf32> to vector<2x32xf32>
    %315 = arith.mulf %314, %288 : vector<2x32xf32>
    %316 = vector.extract_strided_slice %305 {offsets = [0, 0], sizes = [2, 32], strides = [1, 1]} : vector<2x64xf32> to vector<2x32xf32>
    %317 = arith.mulf %316, %307 : vector<2x32xf32>
    %318 = arith.addf %315, %317 : vector<2x32xf32>
    %319 = math.tanh %318 : vector<2x32xf32>
    %320 = arith.mulf %313, %319 : vector<2x32xf32>
    %321 = arith.index_cast %c7_i32_102 : i32 to index
    %c0_108 = arith.constant 0 : index
    %c0_109 = arith.constant 0 : index
    %322 = vector.load %arg9[%321, %c0_108, %c0_109] : memref<8x2x32xf32, #tpu.memory_space<vmem>>, vector<1x2x32xf32>
    %323 = vector.shape_cast %322 : vector<1x2x32xf32> to vector<2x32xf32>
    %324 = vector.shape_cast %320 : vector<2x32xf32> to vector<1x2x32xf32>
    tpu.vector_store %arg9[%321, %c0_108, %c0_109], %324 {strides = array<i32>} : memref<8x2x32xf32, #tpu.memory_space<vmem>>, vector<1x2x32xf32>,
    %c8_i32_110 = arith.constant 8 : i32
    %c0_111 = arith.constant 0 : index
    %c0_112 = arith.constant 0 : index
    %c0_113 = arith.constant 0 : index
    %325 = vector.load %arg9[%c0_111, %c0_112, %c0_113] : memref<8x2x32xf32, #tpu.memory_space<vmem>>, vector<8x2x32xf32>
    %326 = vector.extract_strided_slice %325 {offsets = [0, 0, 0], sizes = [8, 1, 32], strides = [1, 1, 1]} : vector<8x2x32xf32> to vector<8x1x32xf32>
    %327 = vector.shape_cast %326 : vector<8x1x32xf32> to vector<8x32xf32>
    %328 = vector.extract_strided_slice %325 {offsets = [0, 1, 0], sizes = [8, 1, 32], strides = [1, 1, 1]} : vector<8x2x32xf32> to vector<8x1x32xf32>
    %329 = vector.shape_cast %328 : vector<8x1x32xf32> to vector<8x32xf32>
    %330 = tpu.concatenate %327, %329 in 0 : vector<8x32xf32>, vector<8x32xf32> -> vector<16x32xf32>
    %c0_114 = arith.constant 0 : index
    %c0_115 = arith.constant 0 : index
    %331 = vector.load %arg5[%c0_114, %c0_115] : memref<32x128xf32, #tpu.memory_space<vmem>>, vector<32x128xf32>
    %cst_116 = arith.constant dense<0.000000e+00> : vector<16x128xf32>
    %332 = tpu.matmul %330, %331, %cst_116 {dimension_numbers = #tpu.dot_dimension_numbers<[1], [0], [0], [1], [0, 0, 1, 1], [], []>} : vector<16x32xf32>, vector<32x128xf32>, vector<16x128xf32> -> vector<16x128xf32>
    %c0_117 = arith.constant 0 : index
    %c0_118 = arith.constant 0 : index
    %333 = vector.load %arg6[%c0_117, %c0_118] : memref<1x128xf32, #tpu.memory_space<vmem>>, vector<1x128xf32>
    %334 = vector.broadcast %333 : vector<1x128xf32> to vector<16x128xf32>
    %335 = arith.addf %332, %334 : vector<16x128xf32>
    %336 = vector.extract_strided_slice %335 {offsets = [0, 0], sizes = [8, 128], strides = [1, 1]} : vector<16x128xf32> to vector<8x128xf32>
    %c0_119 = arith.constant 0 : index
    %c0_120 = arith.constant 0 : index
    %c0_121 = arith.constant 0 : index
    %337 = vector.load %arg7[%c0_119, %c0_120, %c0_121] : memref<2x8x128xf32, #tpu.memory_space<vmem>>, vector<1x8x128xf32>
    %338 = vector.shape_cast %337 : vector<1x8x128xf32> to vector<8x128xf32>
    %339 = vector.shape_cast %336 : vector<8x128xf32> to vector<1x8x128xf32>
    tpu.vector_store %arg7[%c0_119, %c0_120, %c0_121], %339 {strides = array<i32>} : memref<2x8x128xf32, #tpu.memory_space<vmem>>, vector<1x8x128xf32>,
    %340 = vector.extract_strided_slice %335 {offsets = [8, 0], sizes = [8, 128], strides = [1, 1]} : vector<16x128xf32> to vector<8x128xf32>
    %c1 = arith.constant 1 : index
    %c0_122 = arith.constant 0 : index
    %c0_123 = arith.constant 0 : index
    %341 = vector.load %arg7[%c1, %c0_122, %c0_123] : memref<2x8x128xf32, #tpu.memory_space<vmem>>, vector<1x8x128xf32>
    %342 = vector.shape_cast %341 : vector<1x8x128xf32> to vector<8x128xf32>
    %343 = vector.shape_cast %340 : vector<8x128xf32> to vector<1x8x128xf32>
    tpu.vector_store %arg7[%c1, %c0_122, %c0_123], %343 {strides = array<i32>} : memref<2x8x128xf32, #tpu.memory_space<vmem>>, vector<1x8x128xf32>,
    return
  }
  func.func @transform_0(%arg0: i32) -> (i32, i32, i32) {
    %c0_i32 = arith.constant 0 : i32
    %c0_i32_0 = arith.constant 0 : i32
    %c0_i32_1 = arith.constant 0 : i32
    return %c0_i32, %arg0, %c0_i32_0 : i32, i32, i32
  }
  func.func @transform_1(%arg0: i32) -> (i32, i32) {
    %c0_i32 = arith.constant 0 : i32
    %c0_i32_0 = arith.constant 0 : i32
    %c0_i32_1 = arith.constant 0 : i32
    return %c0_i32, %c0_i32_0 : i32, i32
  }
  func.func @transform_2(%arg0: i32) -> (i32, i32) {
    %c0_i32 = arith.constant 0 : i32
    %c0_i32_0 = arith.constant 0 : i32
    %c0_i32_1 = arith.constant 0 : i32
    return %c0_i32, %c0_i32_0 : i32, i32
  }
  func.func @transform_3(%arg0: i32) -> (i32, i32) {
    %c0_i32 = arith.constant 0 : i32
    %c0_i32_0 = arith.constant 0 : i32
    %c0_i32_1 = arith.constant 0 : i32
    return %c0_i32, %c0_i32_0 : i32, i32
  }
  func.func @transform_4(%arg0: i32) -> (i32, i32) {
    %c0_i32 = arith.constant 0 : i32
    %c0_i32_0 = arith.constant 0 : i32
    %c0_i32_1 = arith.constant 0 : i32
    return %c0_i32, %c0_i32_0 : i32, i32
  }
  func.func @transform_5(%arg0: i32) -> (i32, i32) {
    %c0_i32 = arith.constant 0 : i32
    %c0_i32_0 = arith.constant 0 : i32
    %c0_i32_1 = arith.constant 0 : i32
    return %c0_i32, %c0_i32_0 : i32, i32
  }
  func.func @transform_6(%arg0: i32) -> (i32, i32, i32) {
    %c0_i32 = arith.constant 0 : i32
    %c0_i32_0 = arith.constant 0 : i32
    %c0_i32_1 = arith.constant 0 : i32
    return %arg0, %c0_i32, %c0_i32_0 : i32, i32, i32
  }
}

</mosaic_0001>

<bundles_post_ra>
// kernel: _lstm_model_forward.1
= control target key start
LH: loop header
LB: loop body
LE: loop exit
PB: predicated region body
PF: predicated region fallthrough
CT: control target
= control target key end

     0   :  { %s1256_s0 = inlined_call_operand.vmem [shape: f32[8,2,32], index: 0, kind: input, shape index: {}]   ;;  %s1257_s1 = inlined_call_operand.vmem [shape: f32[32,128], index: 1, kind: input, shape index: {}]   ;;  %s1258_s2 = inlined_call_operand.vmem [shape: f32[32,128], index: 2, kind: input, shape index: {}]   ;;  %s1259_s3 = inlined_call_operand.vmem [shape: f32[1,128], index: 3, kind: input, shape index: {}]   ;;  %s1260_s4 = inlined_call_operand.vmem [shape: f32[32,128], index: 4, kind: input, shape index: {}]   ;;  %s1261_s5 = inlined_call_operand.vmem [shape: f32[1,128], index: 5, kind: input, shape index: {}]   ;;  %s1262_s6 = inlined_call_operand.hbm [shape: f32[2,8,128], index: 6, kind: output, shape index: {}]  }
   0x1   :  { %v27_v0 = vld [vmem:[%s1257_s1 + $0x18] sm:$0xff]  ;;  %v26_v1 = vld [vmem:[%s1257_s1 + $0x10] sm:$0xff]  ;;  %v25_v2 = vld [vmem:[%s1257_s1 + $0x8] sm:$0xff] }
   0x2   :  { %49 = vmatpush.msra.mxu1 %v27_v0  ;;  %156 = vmatpush.msra.mxu0 %v27_v0  ;;  %v24_v3 = vld [vmem:[%s1257_s1] sm:$0xff] }
   0x3   :  { %102 = vmatpush.msra.mxu2 %v27_v0  ;;  %129 = vmatpush.msra.mxu3 %v27_v0 }
   0x4   :  { %50 = vmatpush.msra.mxu1 %v26_v1  ;;  %157 = vmatpush.msra.mxu0 %v26_v1 }
   0x5   :  { %103 = vmatpush.msra.mxu2 %v26_v1  ;;  %130 = vmatpush.msra.mxu3 %v26_v1 }
   0x6   :  { %11 = vsyncpa [#allocation5], 0  ;;  %51 = vmatpush.msra.mxu1 %v25_v2  ;;  %158 = vmatpush.msra.mxu0 %v25_v2  ;;  %v29_v4 = vld [vmem:[%s1256_s0] sm:$0x3]  ;;  %vm33_vm0 = vcmask 261120   ;;  %v1087_v6 = vld [vmem:[%s1258_s2 + $0x18] sm:$0xff] }
   0x7   :  { %v902_v5 = vld [vmem:[%s1256_s0 + $0x8] sm:$0x3]  ;;  %104 = vmatpush.msra.mxu2 %v25_v2  ;;  %131 = vmatpush.msra.mxu3 %v25_v2  ;;  %v1094_v7 = vld [vmem:[%s1258_s2 + $0x10] sm:$0xff]  ;;  %v1106_v9 = vld [vmem:[%s1258_s2] sm:$0xff]  ;;  %v1025_v10 = vmov 0.0   ;;  %s1026_s17 = smov 64  }
   0x8   :  { %52 = vmatpush.msra.mxu1 %v24_v3  ;;  %159 = vmatpush.msra.mxu0 %v24_v3  ;;  %v1100_v8 = vld [vmem:[%s1258_s2 + $0x8] sm:$0xff]  ;;  %v1117_v11 = vld [vmem:[%s1259_s3] ss:$0 sm:$0xff]  ;;  %s1027_s3 = smov 32   ;;  %v896_v39 = vld [vmem:[%s1256_s0 + $0x2] sm:$0x3] }
   0x9   :  { %895 = vmatmul.msk.f32.vlgmr.msra.gmra.mxu1 %vm33_vm0, %v29_v4  ;;  %903 = vmatmul.msk.f32.vlgmr.msra.gmra.mxu0 %vm33_vm0, %v902_v5  ;;  %v904_v40 = vld [vmem:[%s1256_s0 + $0xa] sm:$0x3]  ;;  %vm317_vm5 = vcmask 254976   ;;  %s1028_s13 = smov [#allocation4]   ;;  %s883_s16 = sshll.u32 %s1262_s6, 4  ;;  %s884_s16 = int_to_ptr.hbm [resolvable:$true] %s883_s16 }
   0xa   :  { %267 = vmatpush.msrb.mxu0 %v1087_v6  ;;  %75 = vmatpush.msrb.mxu1 %v27_v0  ;;  %s881_s14 = sshll.u32 %s1028_s13, 4  ;;  %s882_s14 = int_to_ptr.vmem [resolvable:$true] %s881_s14 }
   0xb   :  { %105 = vmatpush.msra.mxu2 %v24_v3  ;;  %132 = vmatpush.msra.mxu3 %v24_v3 }
   0xc   :  { %268 = vmatpush.msrb.mxu0 %v1094_v7  ;;  %76 = vmatpush.msrb.mxu1 %v26_v1 }
   0xd   :  { %210 = vmatpush.msrb.mxu2 %v27_v0  ;;  %237 = vmatpush.msrb.mxu3 %v27_v0 }
   0xe   :  { %269 = vmatpush.msrb.mxu0 %v1100_v8  ;;  %77 = vmatpush.msrb.mxu1 %v25_v2 }
   0xf   :  { %211 = vmatpush.msrb.mxu2 %v26_v1  ;;  %238 = vmatpush.msrb.mxu3 %v26_v1 }
  0x10   :  { %270 = vmatpush.msrb.mxu0 %v1106_v9  ;;  %78 = vmatpush.msrb.mxu1 %v24_v3 }
  0x11   :  { %271 = vmatmul.f32.vlgmr.msrb.gmra.mxu0 %v1025_v10  ;;  %212 = vmatpush.msrb.mxu2 %v25_v2 }
  0x12   :  { %183 = vmatpush.msra.mxu1 %v27_v0  ;;  %239 = vmatpush.msrb.mxu3 %v25_v2 }
  0x13   :  { %535 = vmatpush.msra.mxu0 %v1087_v6  ;;  %213 = vmatpush.msrb.mxu2 %v24_v3 }
  0x14   :  { %184 = vmatpush.msra.mxu1 %v26_v1  ;;  %240 = vmatpush.msrb.mxu3 %v24_v3 }
  0x15   :  { %536 = vmatpush.msra.mxu0 %v1094_v7  ;;  %897 = vmatmul.msk.f32.vlgmr.msrb.gmra.mxu1 %vm33_vm0, %v896_v39 }
  0x16   :  { %185 = vmatpush.msra.mxu1 %v25_v2 }
  0x17   :  { %537 = vmatpush.msra.mxu0 %v1100_v8 }
  0x18   :  { %186 = vmatpush.msra.mxu1 %v24_v3 }
  0x19   :  { %538 = vmatpush.msra.mxu0 %v1106_v9 }
  0x1a   :  { %334 = vmatpush.msrb.mxu1 %v1087_v6 }
  0x1c   :  { %335 = vmatpush.msrb.mxu1 %v1094_v7 }
  0x1d   :  { %905 = vmatmul.msk.f32.vlgmr.msra.gmra.mxu1 %vm33_vm0, %v904_v40 }
  0x1e   :  { %336 = vmatpush.msrb.mxu1 %v1100_v8 }
  0x20   :  { %337 = vmatpush.msrb.mxu1 %v1106_v9 }
  0x22   :  { %602 = vmatpush.msra.mxu1 %v1087_v6 }
  0x24   :  { %603 = vmatpush.msra.mxu1 %v1094_v7 }
  0x26   :  { %604 = vmatpush.msra.mxu1 %v1100_v8 }
  0x28   :  { %605 = vmatpush.msra.mxu1 %v1106_v9 }
  0x86   :  { %v54_v12 = vpop.f32.mrf.mxu1  ;;  %v161_v13 = vpop.f32.mrf.mxu0 }
  0x87   :  { %v55_v14 = vadd.f32 %v1117_v11, %v54_v12  ;;  %v162_v15 = vadd.f32 %v1117_v11, %v161_v13  ;;  %v898_v12 = vld [vmem:[%s1256_s0 + $0x4] sm:$0x3]  ;;  %v906_v13 = vld [vmem:[%s1256_s0 + $0xc] sm:$0x3] }
  0x88   :  { %899 = vmatmul.msk.f32.vlgmr.msra.gmra.mxu2 %vm33_vm0, %v898_v12 }
  0x89   :  { %57 = vst [vmem:[#allocation2] sm:$0x3] %v55_v14  ;;  %401 = vmatpush.msra.mxu2 %v1087_v6 }
  0x8a   :  { %165 = vst [vmem:[#allocation2 + $0x8] sm:$0x3] %v162_v15 }
  0x8b   :  { %402 = vmatpush.msra.mxu2 %v1094_v7 }
  0x8d   :  { %403 = vmatpush.msra.mxu2 %v1100_v8 }
  0x8e   :  { %v272_v16 = vpop.f32.mrf.mxu0 }
  0x8f   :  { %404 = vmatpush.msra.mxu2 %v1106_v9 }
  0x90   :  { %v251_v17 = vld [vmem:[#allocation2] sm:$0x3]  ;;  %907 = vmatmul.msk.f32.vlgmr.msrb.gmra.mxu2 %vm33_vm0, %v906_v13 }
  0x91   :  { %v275_v18 = vadd.f32 %v272_v16, %v251_v17  ;;  %669 = vmatpush.msrb.mxu2 %v1087_v6 }
  0x92   :  { %v80_v43 = vpop.f32.mrf.mxu1 }
  0x93   :  { %935 = vtanh.f32 %v275_v18  ;;  %v910_v20 = vmul.f32 -1.442695, %v275_v18  ;;  %v81_v44 = vadd.f32 %v1117_v11, %v80_v43  ;;  %670 = vmatpush.msrb.mxu2 %v1094_v7 }
  0x95   :  { %937 = vpow2.f32 %v910_v20  ;;  %84 = vst [vmem:[#allocation2 + $0x2] sm:$0x3] %v81_v44  ;;  %671 = vmatpush.msrb.mxu2 %v1100_v8  ;;  %v900_v44 = vld [vmem:[%s1256_s0 + $0x6] sm:$0x3] }
  0x96   :  { %901 = vmatmul.msk.f32.vlgmr.msra.gmra.mxu3 %vm33_vm0, %v900_v44 }
  0x97   :  { %672 = vmatpush.msrb.mxu2 %v1106_v9  ;;  %468 = vmatpush.msra.mxu3 %v1087_v6 }
  0x99   :  { %v936_v19 = vpop.eup %935  ;;  %469 = vmatpush.msra.mxu3 %v1094_v7 }
  0x9a   :  { %298 = vrot.lane.b32.xlu0 %v936_v19, %s1026_s17  ;;  %v188_v45 = vpop.f32.mrf.mxu1 }
  0x9b   :  { %v938_v21 = vpop.eup %937  ;;  %v189_v46 = vadd.f32 %v1117_v11, %v188_v45  ;;  %v908_v45 = vld [vmem:[%s1256_s0 + $0xe] sm:$0x3]  ;;  %470 = vmatpush.msra.mxu3 %v1100_v8 }
  0x9c   :  { %v279_v22 = vadd.f32 1.0, %v938_v21  ;;  %v319_v48 = vld [vmem:[#allocation2 + $0x2] sm:$0x3] }
  0x9d   :  { %192 = vst [vmem:[#allocation2 + $0xa] sm:$0x3] %v189_v46  ;;  %471 = vmatpush.msra.mxu3 %v1106_v9 }
  0x9e   :  { %939 = vrcp.f32 %v279_v22  ;;  %v291_v28 = vand.u32 2147483648, %v279_v22  ;;  %vm285_vm2 = vweird.f32 %v279_v22  ;;  %v289_v29 = vand.u32 2147483647, %v279_v22  ;;  %909 = vmatmul.msk.f32.vlgmr.msrb.gmra.mxu3 %vm33_vm0, %v908_v45 }
  0x9f   :  { %736 = vmatpush.msrb.mxu3 %v1087_v6 }
  0xa0   :  { %v292_v31 = vor.u32 1.1754944e-38, %v291_v28  ;;  %vm290_vm4 = vcmp.eq.f32.partialorder %v289_v29, 8.507059e+37 }
  0xa1   :  { %737 = vmatpush.msrb.mxu3 %v1094_v7 }
  0xa3   :  { %738 = vmatpush.msrb.mxu3 %v1100_v8 }
  0xa4   :  { %v940_v23 = vpop.eup %939 }
  0xa5   :  { %v281_v24 = vmul.f32 %v940_v23, %v279_v22  ;;  %vm286_vm1 = vweird.f32 %v940_v23  ;;  %739 = vmatpush.msrb.mxu3 %v1106_v9 }
  0xa6   :  { %vm287_vm3 = vmor %vm285_vm2, %vm286_vm1 }
  0xa7   :  { %v282_v25 = vsub.f32 1.0, %v281_v24 }
  0xa9   :  { %v283_v26 = vmul.f32 %v940_v23, %v282_v25 }
  0xab   :  { %v284_v27 = vadd.f32 %v940_v23, %v283_v26 }
  0xad   :  { %v288_v30 = vsel %vm287_vm3, %v940_v23, %v284_v27 }
  0xae   :  { %v293_v33 = vsel %vm290_vm4, %v292_v31, %v288_v30 }
  0xaf   :  { %v296_v35 = vmul.f32 0.0, %v293_v33 }
 0x10b   :  { %v107_v16 = vpop.f32.mrf.mxu2 }
 0x10c   :  { %v299_v32 = vpop.permute.xlu0 %298  ;;  %v108_v17 = vadd.f32 %v1117_v11, %v107_v16 }
 0x10d   :  { %v301_v34 = vmul.f32 %v299_v32, %v293_v33 }
 0x10e   :  { %111 = vst [vmem:[#allocation2 + $0x4] sm:$0x3] %v108_v17 }
 0x10f   :  { %303 = vrot.lane.b32.xlu0 %v301_v34, %s1027_s3 }
 0x113   :  { %v215_v18 = vpop.f32.mrf.mxu2 }
 0x114   :  { %v216_v19 = vadd.f32 %v1117_v11, %v215_v18 }
 0x115   :  { %v386_v21 = vld [vmem:[#allocation2 + $0x4] sm:$0x3] }
 0x116   :  { %219 = vst [vmem:[#allocation2 + $0xc] sm:$0x3] %v216_v19 }
 0x181   :  { %v304_v36 = vpop.permute.xlu0 %303 }
 0x182   :  { %v306_v37 = vadd.f32 %v304_v36, %v296_v35 }
 0x184   :  { %941 = vtanh.f32 %v306_v37 }
 0x18a   :  { %v942_v38 = vpop.eup %941 }
 0x18b   :  { %309 = vrot.lane.b32.xlu1 %v942_v38, %s1026_s17 }
 0x1fd   :  { %v310_v41 = vpop.permute.xlu1 %309 }
 0x1fe   :  { %v312_v42 = vmul.f32 %v310_v41, %v293_v33 }
 0x200   :  { %314 = vrot.lane.b32.xlu1 %v312_v42, %s1027_s3 }
 0x272   :  { %v315_v47 = vpop.permute.xlu1 %314 }
 0x273   :  { %318 = vst.msk [vmem:[#allocation3] sm:$0x3] %vm317_vm5, %v315_v47  ;;  %911 = vmatmul.msk.f32.vlgmr.msrb.gmra.mxu1 %vm33_vm0, %v315_v47 }
 0x2f0   :  { %v339_v49 = vpop.f32.mrf.mxu1 }
 0x2f1   :  { %v342_v50 = vadd.f32 %v339_v49, %v319_v48  ;;  %v134_v49 = vpop.f32.mrf.mxu3 }
 0x2f3   :  { %943 = vtanh.f32 %v342_v50  ;;  %v912_v52 = vmul.f32 -1.442695, %v342_v50  ;;  %v135_v50 = vadd.f32 %v1117_v11, %v134_v49 }
 0x2f5   :  { %945 = vpow2.f32 %v912_v52  ;;  %138 = vst [vmem:[#allocation2 + $0x6] sm:$0x3] %v135_v50 }
 0x2f9   :  { %v944_v51 = vpop.eup %943  ;;  %v242_v6 = vpop.f32.mrf.mxu3 }
 0x2fa   :  { %365 = vrot.lane.b32.xlu2 %v944_v51, %s1026_s17  ;;  %v243_v7 = vadd.f32 %v1117_v11, %v242_v6 }
 0x2fb   :  { %v946_v53 = vpop.eup %945 }
 0x2fc   :  { %v346_v54 = vadd.f32 1.0, %v946_v53  ;;  %246 = vst [vmem:[#allocation2 + $0xe] sm:$0x3] %v243_v7  ;;  %v453_v8 = vld [vmem:[#allocation2 + $0x6] sm:$0x3] }
 0x2fe   :  { %947 = vrcp.f32 %v346_v54  ;;  %v358_v60 = vand.u32 2147483648, %v346_v54  ;;  %vm352_vm7 = vweird.f32 %v346_v54  ;;  %v356_v61 = vand.u32 2147483647, %v346_v54 }
 0x300   :  { %v359_v63 = vor.u32 1.1754944e-38, %v358_v60  ;;  %vm357_vm9 = vcmp.eq.f32.partialorder %v356_v61, 8.507059e+37 }
 0x304   :  { %v948_v55 = vpop.eup %947 }
 0x305   :  { %v348_v56 = vmul.f32 %v948_v55, %v346_v54  ;;  %vm353_vm6 = vweird.f32 %v948_v55 }
 0x306   :  { %vm354_vm8 = vmor %vm352_vm7, %vm353_vm6 }
 0x307   :  { %v349_v57 = vsub.f32 1.0, %v348_v56 }
 0x309   :  { %v350_v58 = vmul.f32 %v948_v55, %v349_v57 }
 0x30b   :  { %v351_v59 = vadd.f32 %v948_v55, %v350_v58 }
 0x30d   :  { %v355_v62 = vsel %vm354_vm8, %v948_v55, %v351_v59 }
 0x30e   :  { %v360_v1 = vsel %vm357_vm9, %v359_v63, %v355_v62 }
 0x30f   :  { %v363_v3 = vmul.f32 %v360_v1, %v306_v37 }
 0x354   :  { %v366_v0 = vpop.permute.xlu2 %365 }
 0x355   :  { %v368_v2 = vmul.f32 %v366_v0, %v360_v1 }
 0x357   :  { %370 = vrot.lane.b32.xlu2 %v368_v2, %s1027_s3 }
 0x3b1   :  { %v371_v4 = vpop.permute.xlu2 %370 }
 0x3b2   :  { %v373_v5 = vadd.f32 %v371_v4, %v363_v3 }
 0x3b4   :  { %949 = vtanh.f32 %v373_v5 }
 0x3ba   :  { %v950_v10 = vpop.eup %949 }
 0x3bb   :  { %376 = vrot.lane.b32.xlu0 %v950_v10, %s1026_s17 }
 0x42d   :  { %v377_v14 = vpop.permute.xlu0 %376 }
 0x42e   :  { %v379_v15 = vmul.f32 %v377_v14, %v360_v1 }
 0x430   :  { %381 = vrot.lane.b32.xlu1 %v379_v15, %s1027_s3  ;;  %v520_v15 = vld [vmem:[#allocation2 + $0x8] sm:$0x3] }
 0x4a2   :  { %v382_v20 = vpop.permute.xlu1 %381 }
 0x4a3   :  { %385 = vst.msk [vmem:[#allocation3 + $0x2] sm:$0x3] %vm317_vm5, %v382_v20  ;;  %913 = vmatmul.msk.f32.vlgmr.msra.gmra.mxu2 %vm33_vm0, %v382_v20 }
 0x526   :  { %v406_v22 = vpop.f32.mrf.mxu2 }
 0x527   :  { %v409_v23 = vadd.f32 %v406_v22, %v386_v21 }
 0x529   :  { %951 = vtanh.f32 %v409_v23  ;;  %v914_v25 = vmul.f32 -1.442695, %v409_v23 }
 0x52b   :  { %953 = vpow2.f32 %v914_v25 }
 0x52f   :  { %v952_v24 = vpop.eup %951 }
 0x530   :  { %432 = vrot.lane.b32.xlu2 %v952_v24, %s1026_s17 }
 0x531   :  { %v954_v26 = vpop.eup %953 }
 0x532   :  { %v413_v27 = vadd.f32 1.0, %v954_v26 }
 0x534   :  { %955 = vrcp.f32 %v413_v27  ;;  %v425_v33 = vand.u32 2147483648, %v413_v27  ;;  %vm419_vm11 = vweird.f32 %v413_v27  ;;  %v423_v34 = vand.u32 2147483647, %v413_v27 }
 0x536   :  { %v426_v36 = vor.u32 1.1754944e-38, %v425_v33  ;;  %vm424_vm13 = vcmp.eq.f32.partialorder %v423_v34, 8.507059e+37 }
 0x53a   :  { %v956_v28 = vpop.eup %955 }
 0x53b   :  { %v415_v29 = vmul.f32 %v956_v28, %v413_v27  ;;  %vm420_vm10 = vweird.f32 %v956_v28 }
 0x53c   :  { %vm421_vm12 = vmor %vm419_vm11, %vm420_vm10 }
 0x53d   :  { %v416_v30 = vsub.f32 1.0, %v415_v29 }
 0x53f   :  { %v417_v31 = vmul.f32 %v956_v28, %v416_v30 }
 0x541   :  { %v418_v32 = vadd.f32 %v956_v28, %v417_v31 }
 0x543   :  { %v422_v35 = vsel %vm421_vm12, %v956_v28, %v418_v32 }
 0x544   :  { %v427_v38 = vsel %vm424_vm13, %v426_v36, %v422_v35 }
 0x545   :  { %v430_v40 = vmul.f32 %v427_v38, %v373_v5 }
 0x58a   :  { %v433_v37 = vpop.permute.xlu2 %432 }
 0x58b   :  { %v435_v39 = vmul.f32 %v433_v37, %v427_v38 }
 0x58d   :  { %437 = vrot.lane.b32.xlu0 %v435_v39, %s1027_s3 }
 0x5ff   :  { %v438_v41 = vpop.permute.xlu0 %437 }
 0x600   :  { %v440_v42 = vadd.f32 %v438_v41, %v430_v40  ;;  %v587_v41 = vld [vmem:[#allocation2 + $0xa] sm:$0x3] }
 0x602   :  { %957 = vtanh.f32 %v440_v42 }
 0x608   :  { %v958_v43 = vpop.eup %957 }
 0x609   :  { %443 = vrot.lane.b32.xlu1 %v958_v43, %s1026_s17 }
 0x67b   :  { %v444_v46 = vpop.permute.xlu1 %443 }
 0x67c   :  { %v446_v47 = vmul.f32 %v444_v46, %v427_v38 }
 0x67e   :  { %448 = vrot.lane.b32.xlu2 %v446_v47, %s1027_s3 }
 0x6d8   :  { %v449_v48 = vpop.permute.xlu2 %448 }
 0x6d9   :  { %452 = vst.msk [vmem:[#allocation3 + $0x4] sm:$0x3] %vm317_vm5, %v449_v48  ;;  %915 = vmatmul.msk.f32.vlgmr.msra.gmra.mxu3 %vm33_vm0, %v449_v48 }
 0x75c   :  { %v473_v51 = vpop.f32.mrf.mxu3 }
 0x75d   :  { %v476_v9 = vadd.f32 %v473_v51, %v453_v8 }
 0x75f   :  { %959 = vtanh.f32 %v476_v9  ;;  %v916_v53 = vmul.f32 -1.442695, %v476_v9 }
 0x761   :  { %961 = vpow2.f32 %v916_v53 }
 0x765   :  { %v960_v52 = vpop.eup %959 }
 0x766   :  { %499 = vrot.lane.b32.xlu0 %v960_v52, %s1026_s17 }
 0x767   :  { %v962_v54 = vpop.eup %961 }
 0x768   :  { %v480_v55 = vadd.f32 1.0, %v962_v54 }
 0x76a   :  { %963 = vrcp.f32 %v480_v55  ;;  %v492_v11 = vand.u32 2147483648, %v480_v55  ;;  %vm486_vm15 = vweird.f32 %v480_v55  ;;  %v490_v61 = vand.u32 2147483647, %v480_v55 }
 0x76c   :  { %v493_v63 = vor.u32 1.1754944e-38, %v492_v11  ;;  %vm491_vm2 = vcmp.eq.f32.partialorder %v490_v61, 8.507059e+37 }
 0x770   :  { %v964_v56 = vpop.eup %963 }
 0x771   :  { %v482_v57 = vmul.f32 %v964_v56, %v480_v55  ;;  %vm487_vm14 = vweird.f32 %v964_v56 }
 0x772   :  { %vm488_vm1 = vmor %vm486_vm15, %vm487_vm14 }
 0x773   :  { %v483_v58 = vsub.f32 1.0, %v482_v57 }
 0x775   :  { %v484_v59 = vmul.f32 %v964_v56, %v483_v58 }
 0x777   :  { %v485_v60 = vadd.f32 %v964_v56, %v484_v59 }
 0x779   :  { %v489_v62 = vsel %vm488_vm1, %v964_v56, %v485_v60 }
 0x77a   :  { %v494_v1 = vsel %vm491_vm2, %v493_v63, %v489_v62  ;;  %v654_v62 = vld [vmem:[#allocation2 + $0xc] sm:$0x3] }
 0x77b   :  { %v497_v3 = vmul.f32 %v494_v1, %v440_v42 }
 0x7d8   :  { %v500_v0 = vpop.permute.xlu0 %499 }
 0x7d9   :  { %v502_v2 = vmul.f32 %v500_v0, %v494_v1 }
 0x7db   :  { %504 = vrot.lane.b32.xlu1 %v502_v2, %s1027_s3 }
 0x84d   :  { %v505_v4 = vpop.permute.xlu1 %504 }
 0x84e   :  { %v507_v5 = vadd.f32 %v505_v4, %v497_v3 }
 0x850   :  { %965 = vtanh.f32 %v507_v5 }
 0x856   :  { %v966_v10 = vpop.eup %965 }
 0x857   :  { %510 = vrot.lane.b32.xlu2 %v966_v10, %s1026_s17 }
 0x8b1   :  { %v511_v12 = vpop.permute.xlu2 %510 }
 0x8b2   :  { %v513_v13 = vmul.f32 %v511_v12, %v494_v1 }
 0x8b4   :  { %515 = vrot.lane.b32.xlu0 %v513_v13, %s1027_s3 }
 0x926   :  { %v516_v14 = vpop.permute.xlu0 %515 }
 0x927   :  { %519 = vst.msk [vmem:[#allocation3 + $0x6] sm:$0x3] %vm317_vm5, %v516_v14  ;;  %917 = vmatmul.msk.f32.vlgmr.msra.gmra.mxu0 %vm33_vm0, %v516_v14 }
 0x9a4   :  { %v540_v16 = vpop.f32.mrf.mxu0 }
 0x9a5   :  { %v543_v17 = vadd.f32 %v540_v16, %v520_v15 }
 0x9a7   :  { %967 = vtanh.f32 %v543_v17  ;;  %v918_v19 = vmul.f32 -1.442695, %v543_v17 }
 0x9a9   :  { %969 = vpow2.f32 %v918_v19 }
 0x9ad   :  { %v968_v18 = vpop.eup %967 }
 0x9ae   :  { %566 = vrot.lane.b32.xlu1 %v968_v18, %s1026_s17 }
 0x9af   :  { %v970_v20 = vpop.eup %969 }
 0x9b0   :  { %v547_v21 = vadd.f32 1.0, %v970_v20 }
 0x9b2   :  { %971 = vrcp.f32 %v547_v21  ;;  %v559_v27 = vand.u32 2147483648, %v547_v21  ;;  %vm553_vm4 = vweird.f32 %v547_v21  ;;  %v557_v28 = vand.u32 2147483647, %v547_v21 }
 0x9b4   :  { %v560_v30 = vor.u32 1.1754944e-38, %v559_v27  ;;  %vm558_vm7 = vcmp.eq.f32.partialorder %v557_v28, 8.507059e+37 }
 0x9b8   :  { %v972_v22 = vpop.eup %971 }
 0x9b9   :  { %v549_v23 = vmul.f32 %v972_v22, %v547_v21  ;;  %vm554_vm3 = vweird.f32 %v972_v22 }
 0x9ba   :  { %vm555_vm6 = vmor %vm553_vm4, %vm554_vm3 }
 0x9bb   :  { %v550_v24 = vsub.f32 1.0, %v549_v23 }
 0x9bd   :  { %v551_v25 = vmul.f32 %v972_v22, %v550_v24 }
 0x9bf   :  { %v552_v26 = vadd.f32 %v972_v22, %v551_v25 }
 0x9c1   :  { %v556_v29 = vsel %vm555_vm6, %v972_v22, %v552_v26  ;;  %vm808_vm6 = vcmask 1042434  }
 0x9c2   :  { %v561_v32 = vsel %vm558_vm7, %v560_v30, %v556_v29  ;;  %v721_v29 = vld [vmem:[#allocation2 + $0xe] sm:$0x3]  ;;  %vm805_vm7 = vcmask 1041409  }
 0x9c3   :  { %v564_v34 = vmul.f32 %v561_v32, %v507_v5 }
 0xa20   :  { %v567_v31 = vpop.permute.xlu1 %566 }
 0xa21   :  { %v569_v33 = vmul.f32 %v567_v31, %v561_v32 }
 0xa23   :  { %571 = vrot.lane.b32.xlu2 %v569_v33, %s1027_s3 }
 0xa7d   :  { %v572_v35 = vpop.permute.xlu2 %571 }
 0xa7e   :  { %v574_v36 = vadd.f32 %v572_v35, %v564_v34 }
 0xa80   :  { %973 = vtanh.f32 %v574_v36 }
 0xa86   :  { %v974_v37 = vpop.eup %973 }
 0xa87   :  { %577 = vrot.lane.b32.xlu0 %v974_v37, %s1026_s17 }
 0xaf9   :  { %v578_v38 = vpop.permute.xlu0 %577 }
 0xafa   :  { %v580_v39 = vmul.f32 %v578_v38, %v561_v32 }
 0xafc   :  { %582 = vrot.lane.b32.xlu1 %v580_v39, %s1027_s3 }
 0xb6e   :  { %v583_v40 = vpop.permute.xlu1 %582 }
 0xb6f   :  { %586 = vst.msk [vmem:[#allocation3 + $0x8] sm:$0x3] %vm317_vm5, %v583_v40  ;;  %919 = vmatmul.msk.f32.vlgmr.msra.gmra.mxu1 %vm33_vm0, %v583_v40 }
 0xbec   :  { %v607_v42 = vpop.f32.mrf.mxu1 }
 0xbed   :  { %v610_v43 = vadd.f32 %v607_v42, %v587_v41 }
 0xbef   :  { %975 = vtanh.f32 %v610_v43  ;;  %v920_v45 = vmul.f32 -1.442695, %v610_v43 }
 0xbf1   :  { %977 = vpow2.f32 %v920_v45 }
 0xbf5   :  { %v976_v44 = vpop.eup %975 }
 0xbf6   :  { %633 = vrot.lane.b32.xlu2 %v976_v44, %s1026_s17 }
 0xbf7   :  { %v978_v46 = vpop.eup %977 }
 0xbf8   :  { %v614_v47 = vadd.f32 1.0, %v978_v46 }
 0xbfa   :  { %979 = vrcp.f32 %v614_v47  ;;  %v626_v8 = vand.u32 2147483648, %v614_v47  ;;  %vm620_vm9 = vweird.f32 %v614_v47  ;;  %v624_v51 = vand.u32 2147483647, %v614_v47 }
 0xbfc   :  { %v627_v52 = vor.u32 1.1754944e-38, %v626_v8  ;;  %vm625_vm11 = vcmp.eq.f32.partialorder %v624_v51, 8.507059e+37  ;;  %v842_v51 = vld [vmem:[%s1260_s4 + $0x18] sm:$0xff] }
 0xbfd   :  { %863 = vmatpush.msrb.mxu0 %v842_v51 }
 0xc00   :  { %v980_v48 = vpop.eup %979 }
 0xc01   :  { %v616_v49 = vmul.f32 %v980_v48, %v614_v47  ;;  %vm621_vm8 = vweird.f32 %v980_v48 }
 0xc02   :  { %vm622_vm10 = vmor %vm620_vm9, %vm621_vm8  ;;  %vm811_vm8 = vcmask 1043459   ;;  %vm814_vm9 = vcmask 1044484  }
 0xc03   :  { %v617_v50 = vsub.f32 1.0, %v616_v49 }
 0xc05   :  { %v618_v6 = vmul.f32 %v980_v48, %v617_v50 }
 0xc07   :  { %v619_v7 = vadd.f32 %v980_v48, %v618_v6 }
 0xc09   :  { %v623_v9 = vsel %vm622_vm10, %v980_v48, %v619_v7  ;;  %vm817_vm10 = vcmask 1045509  }
 0xc0a   :  { %v628_v54 = vsel %vm625_vm11, %v627_v52, %v623_v9  ;;  %v841_v9 = vld [vmem:[%s1260_s4 + $0x10] sm:$0xff]  ;;  %v840_v52 = vld [vmem:[%s1260_s4 + $0x8] sm:$0xff]  ;;  %vm823_vm11 = vcmask 1047559  }
 0xc0b   :  { %v631_v56 = vmul.f32 %v628_v54, %v574_v36  ;;  %864 = vmatpush.msrb.mxu0 %v841_v9 }
 0xc0d   :  { %865 = vmatpush.msrb.mxu0 %v840_v52 }
 0xc50   :  { %v634_v53 = vpop.permute.xlu2 %633 }
 0xc51   :  { %v636_v55 = vmul.f32 %v634_v53, %v628_v54  ;;  %v839_v53 = vld [vmem:[%s1260_s4] sm:$0xff] }
 0xc52   :  { %866 = vmatpush.msrb.mxu0 %v839_v53 }
 0xc53   :  { %638 = vrot.lane.b32.xlu0 %v636_v55, %s1027_s3  ;;  %v790_v55 = vld [vmem:[#allocation3 + $0x4] sm:$0x3] }
 0xcc5   :  { %v639_v57 = vpop.permute.xlu0 %638 }
 0xcc6   :  { %v641_v58 = vadd.f32 %v639_v57, %v631_v56  ;;  %v791_v57 = vld [vmem:[#allocation3 + $0x6] sm:$0x3] }
 0xcc8   :  { %981 = vtanh.f32 %v641_v58 }
 0xcce   :  { %v982_v59 = vpop.eup %981 }
 0xccf   :  { %644 = vrot.lane.b32.xlu1 %v982_v59, %s1026_s17 }
 0xd41   :  { %v645_v60 = vpop.permute.xlu1 %644 }
 0xd42   :  { %v647_v11 = vmul.f32 %v645_v60, %v628_v54  ;;  %v789_v54 = vld [vmem:[#allocation3 + $0x2] sm:$0x3] }
 0xd43   :  { %v804_v59 = vrot.slane %v789_v54, 7 }
 0xd44   :  { %649 = vrot.lane.b32.xlu2 %v647_v11, %s1027_s3  ;;  %v807_v11 = vrot.slane %v790_v55, 6 }
 0xd9e   :  { %v650_v61 = vpop.permute.xlu2 %649 }
 0xd9f   :  { %653 = vst.msk [vmem:[#allocation3 + $0xa] sm:$0x3] %vm317_vm5, %v650_v61  ;;  %921 = vmatmul.msk.f32.vlgmr.msrb.gmra.mxu2 %vm33_vm0, %v650_v61 }
 0xda6   :  { %v793_v60 = vld [vmem:[#allocation3 + $0xa] sm:$0x3] }
 0xe22   :  { %v674_v63 = vpop.f32.mrf.mxu2 }
 0xe23   :  { %v677_v0 = vadd.f32 %v674_v63, %v654_v62  ;;  %v810_v62 = vrot.slane %v791_v57, 5  ;;  %v788_v63 = vld [vmem:[#allocation3] sm:$0x3] }
 0xe25   :  { %983 = vtanh.f32 %v677_v0  ;;  %v922_v2 = vmul.f32 -1.442695, %v677_v0 }
 0xe27   :  { %985 = vpow2.f32 %v922_v2  ;;  %v816_v2 = vrot.slane %v793_v60, 3 }
 0xe2b   :  { %v984_v1 = vpop.eup %983 }
 0xe2c   :  { %700 = vrot.lane.b32.xlu0 %v984_v1, %s1026_s17  ;;  %v806_v1 = vsel %vm805_vm7, %v804_v59, %v788_v63 }
 0xe2d   :  { %v986_v3 = vpop.eup %985 }
 0xe2e   :  { %v681_v4 = vadd.f32 1.0, %v986_v3  ;;  %v809_v3 = vsel %vm808_vm6, %v807_v11, %v806_v1 }
 0xe30   :  { %987 = vrcp.f32 %v681_v4  ;;  %v693_v15 = vand.u32 2147483648, %v681_v4  ;;  %vm687_vm13 = vweird.f32 %v681_v4  ;;  %v691_v16 = vand.u32 2147483647, %v681_v4 }
 0xe32   :  { %v694_v18 = vor.u32 1.1754944e-38, %v693_v15  ;;  %vm692_vm15 = vcmp.eq.f32.partialorder %v691_v16, 8.507059e+37  ;;  %v827_v16 = vrot.slane %v790_v55, 7 }
 0xe36   :  { %v988_v5 = vpop.eup %987 }
 0xe37   :  { %v683_v10 = vmul.f32 %v988_v5, %v681_v4  ;;  %vm688_vm12 = vweird.f32 %v988_v5 }
 0xe38   :  { %vm689_vm14 = vmor %vm687_vm13, %vm688_vm12 }
 0xe39   :  { %v684_v12 = vsub.f32 1.0, %v683_v10 }
 0xe3b   :  { %v685_v13 = vmul.f32 %v988_v5, %v684_v12 }
 0xe3d   :  { %v686_v14 = vadd.f32 %v988_v5, %v685_v13 }
 0xe3f   :  { %v690_v17 = vsel %vm689_vm14, %v988_v5, %v686_v14  ;;  %v812_v5 = vsel %vm811_vm8, %v810_v62, %v809_v3 }
 0xe40   :  { %v695_v20 = vsel %vm692_vm15, %v694_v18, %v690_v17  ;;  %v825_v18 = vrot.slane %v788_v63, 1 }
 0xe41   :  { %v698_v22 = vmul.f32 %v695_v20, %v641_v58  ;;  %v792_v58 = vld [vmem:[#allocation3 + $0x8] sm:$0x3] }
 0xe42   :  { %v813_v0 = vrot.slane %v792_v58, 4 }
 0xe44   :  { %v815_v12 = vsel %vm814_vm9, %v813_v0, %v812_v5 }
 0xe45   :  { %v818_v13 = vsel %vm817_vm10, %v816_v2, %v815_v12 }
 0xe9e   :  { %v701_v19 = vpop.permute.xlu0 %700 }
 0xe9f   :  { %v703_v21 = vmul.f32 %v701_v19, %v695_v20  ;;  %v829_v19 = vrot.slane %v791_v57, 6 }
 0xea1   :  { %705 = vrot.lane.b32.xlu1 %v703_v21, %s1027_s3  ;;  %v826_v21 = vsel %vm805_vm7, %v789_v54, %v825_v18 }
 0xf13   :  { %v706_v23 = vpop.permute.xlu1 %705 }
 0xf14   :  { %v708_v24 = vadd.f32 %v706_v23, %v698_v22  ;;  %v833_v22 = vrot.slane %v793_v60, 4  ;;  %v828_v23 = vsel %vm808_vm6, %v827_v16, %v826_v21 }
 0xf16   :  { %989 = vtanh.f32 %v708_v24 }
 0xf1c   :  { %v990_v25 = vpop.eup %989 }
 0xf1d   :  { %711 = vrot.lane.b32.xlu2 %v990_v25, %s1026_s17  ;;  %v830_v25 = vsel %vm811_vm8, %v829_v19, %v828_v23 }
 0xf77   :  { %v712_v26 = vpop.permute.xlu2 %711 }
 0xf78   :  { %v714_v27 = vmul.f32 %v712_v26, %v695_v20  ;;  %v831_v20 = vrot.slane %v792_v58, 5 }
 0xf7a   :  { %716 = vrot.lane.b32.xlu0 %v714_v27, %s1027_s3  ;;  %v832_v27 = vsel %vm814_vm9, %v831_v20, %v830_v25 }
 0xfec   :  { %v717_v28 = vpop.permute.xlu0 %716 }
 0xfed   :  { %720 = vst.msk [vmem:[#allocation3 + $0xc] sm:$0x3] %vm317_vm5, %v717_v28  ;;  %923 = vmatmul.msk.f32.vlgmr.msrb.gmra.mxu3 %vm33_vm0, %v717_v28  ;;  %v834_v28 = vsel %vm817_vm10, %v833_v22, %v832_v27 }
 0xff4   :  { %v794_v61 = vld [vmem:[#allocation3 + $0xc] sm:$0x3] }
 0xff5   :  { %v819_v4 = vrot.slane %v794_v61, 2 }
0x1070   :  { %v741_v30 = vpop.f32.mrf.mxu3 }
0x1071   :  { %v744_v31 = vadd.f32 %v741_v30, %v721_v29 }
0x1073   :  { %991 = vtanh.f32 %v744_v31  ;;  %v924_v33 = vmul.f32 -1.442695, %v744_v31  ;;  %v934_v31 = vld [vmem:[%s1261_s5] ss:$0 sm:$0xff] }
0x1075   :  { %993 = vpow2.f32 %v924_v33 }
0x1079   :  { %v992_v32 = vpop.eup %991 }
0x107a   :  { %767 = vrot.lane.b32.xlu1 %v992_v32, %s1026_s17 }
0x107b   :  { %v994_v34 = vpop.eup %993 }
0x107c   :  { %v748_v35 = vadd.f32 1.0, %v994_v34 }
0x107e   :  { %995 = vrcp.f32 %v748_v35  ;;  %v760_v41 = vand.u32 2147483648, %v748_v35  ;;  %vm754_vm2 = vweird.f32 %v748_v35  ;;  %v758_v42 = vand.u32 2147483647, %v748_v35 }
0x1080   :  { %v761_v44 = vor.u32 1.1754944e-38, %v760_v41  ;;  %vm759_vm4 = vcmp.eq.f32.partialorder %v758_v42, 8.507059e+37 }
0x1084   :  { %v996_v36 = vpop.eup %995 }
0x1085   :  { %v750_v37 = vmul.f32 %v996_v36, %v748_v35  ;;  %vm755_vm1 = vweird.f32 %v996_v36 }
0x1086   :  { %vm756_vm3 = vmor %vm754_vm2, %vm755_vm1 }
0x1087   :  { %v751_v38 = vsub.f32 1.0, %v750_v37 }
0x1089   :  { %v752_v39 = vmul.f32 %v996_v36, %v751_v38 }
0x108b   :  { %v753_v40 = vadd.f32 %v996_v36, %v752_v39 }
0x108d   :  { %v757_v43 = vsel %vm756_vm3, %v996_v36, %v753_v40 }
0x108e   :  { %v762_v46 = vsel %vm759_vm4, %v761_v44, %v757_v43 }
0x108f   :  { %v765_v48 = vmul.f32 %v762_v46, %v708_v24  ;;  %v835_v24 = vrot.slane %v794_v61, 3 }
0x10ec   :  { %v768_v45 = vpop.permute.xlu1 %767 }
0x10ed   :  { %v770_v47 = vmul.f32 %v768_v45, %v762_v46 }
0x10ef   :  { %772 = vrot.lane.b32.xlu2 %v770_v47, %s1027_s3 }
0x1149   :  { %v773_v49 = vpop.permute.xlu2 %772 }
0x114a   :  { %v775_v50 = vadd.f32 %v773_v49, %v765_v48 }
0x114c   :  { %997 = vtanh.f32 %v775_v50 }
0x1152   :  { %v998_v6 = vpop.eup %997 }
0x1153   :  { %778 = vrot.lane.b32.xlu0 %v998_v6, %s1026_s17  ;;  %s1029_s17 = smov 128  }
0x11c5   :  { %v779_v7 = vpop.permute.xlu0 %778 }
0x11c6   :  { %v781_v8 = vmul.f32 %v779_v7, %v762_v46 }
0x11c8   :  { %783 = vrot.lane.b32.xlu1 %v781_v8, %s1027_s3  ;;  %s1030_s3 = smov 8  }
0x123a   :  { %v784_v56 = vpop.permute.xlu1 %783 }
0x123b   :  { %787 = vst.msk [vmem:[#allocation3 + $0xe] sm:$0x3] %vm317_vm5, %v784_v56  ;;  %vm820_vm5 = vcmask 1046534  }
0x123c   :  { %v821_v15 = vsel %vm820_vm5, %v819_v4, %v818_v13  ;;  %v836_v29 = vsel %vm820_vm5, %v835_v24, %v834_v28 }
0x1242   :  { %v795_v10 = vld [vmem:[#allocation3 + $0xe] sm:$0x3] }
0x1243   :  { %v822_v14 = vrot.slane %v795_v10, 1  ;;  %v837_v26 = vrot.slane %v795_v10, 2 }
0x1245   :  { %v824_v17 = vsel %vm823_vm11, %v822_v14, %v821_v15  ;;  %v838_v30 = vsel %vm823_vm11, %v837_v26, %v836_v29 }
0x1246   :  { %925 = vmatmul.msk.f32.vlgmr.msrb.gmra.mxu0 %vm33_vm0, %v824_v17 }
0x124e   :  { %926 = vmatmul.msk.f32.gmra.mxu0 %vm33_vm0, %v838_v30 }
0x12c3   :  { %v868_v32 = vpop.f32.mrf.mxu0 }
0x12c4   :  { %v869_v33 = vadd.f32 %v934_v31, %v868_v32 }
0x12c6   :  { %874 = vst [vmem:[#allocation4] sm:$0xff] %v869_v33 }
0x12cb   :  { %v871_v34 = vpop.f32.mrf.mxu0 }
0x12cc   :  { %v872_v35 = vadd.f32 %v934_v31, %v871_v34 }
0x12ce   :  { %876 = vst [vmem:[#allocation4 + $0x8] sm:$0xff] %v872_v35 }
0x12cf   :  { %889 = dma.vmem_to_hbm [thread:$0]  %s882_s14, 256, %s884_s16, [#allocation5], %s1029_s17, %s1029_s17, %s1030_s3  }
0x12d0   :  { %1023 = dma.done.wait [#allocation5], 256  }
0x12d1   :  { %1024 = vsyncadd [#allocation5], 4294967040 }
0x12d2   :  { %894 = vsyncpa [#allocation5], 1 }

</bundles_post_ra>
